<compile_context>
chip_gen: v5e
topology: v5e:2x2
jax: 0.10.0
libtpu: 0.0.40
codegen_flags: <defaults>
</compile_context>

<pallas_src>
import jax
import jax.numpy as jnp
from jax import lax
from jax.experimental import pallas as pl
from jax.experimental.pallas import tpu as pltpu

SELU_ALPHA = 1.6732632423543772
SELU_SCALE = 1.0507009873554805
_SUBLANE = 8


def _selu(x):
    # exp only on the non-positive branch -> no overflow / wasted EUP work for x >> 0.
    neg = SELU_ALPHA * (jnp.exp(jnp.minimum(x, 0.0)) - 1.0)
    return SELU_SCALE * jnp.where(x > 0, x, neg)


def luong_gate_attn_kernel(
    h_ref,       # (TB, H)      f32
    ctx_ref,     # (TB, S, H)   f32 or bf16 (upcast in-kernel)
    w_h_ref,     # (H, 2H)      matmul dtype: [w_in^T | w_out[:, :H]^T], grid-resident
    w_c_ref,     # (H, H)       matmul dtype:  w_out[:, H:]^T,           grid-resident
    b_in_ref,    # (1, H)       f32
    b_out_ref,   # (1, H)       f32
    out_ref,     # (TB, H)      f32
    wts_ref,     # (TB, S)      f32
):
    H = out_ref.shape[-1]
    h = h_ref[...]
    ctx32 = ctx_ref[...].astype(jnp.float32)      # f32 math (v5e has no bf16 VPU)

    # Fused h-side projection: ONE MXU matmul for [w_in ; w_out_h], f32 accumulation.
    # Issued before the softmax so the MXU overlaps the VPU/XLU attention work.
    w_h = w_h_ref[...]
    hw = jnp.dot(h.astype(w_h.dtype), w_h, preferred_element_type=jnp.float32)  # (TB, 2H)
    gamma = _selu(hw[:, :H] + b_in_ref[...])       # m_linear_in (dropout = identity in eval)
    out_h = hw[:, H:]                              # h-half of m_linear_output pre-activation

    # Attention scores: VPU broadcast-multiply + lane reduce (no N=1 MXU matvec).
    scores = jnp.sum(ctx32 * gamma[:, None, :], axis=-1)            # (TB, S) f32

    # Exact softmax over the sequence axis (parity with torch.softmax; weights sum to 1).
    m = jnp.max(scores, axis=-1, keepdims=True)
    e = jnp.exp(scores - m)
    w = e / jnp.sum(e, axis=-1, keepdims=True)
    wts_ref[...] = w

    # Context vector: broadcast-multiply + sublane reduce (VPU/XLU again).
    c_t = jnp.sum(w[:, :, None] * ctx32, axis=1)                    # (TB, H) f32

    # c_t-half of m_linear_output (second MXU matmul), then bias + SELU.
    w_c = w_c_ref[...]
    out = out_h + jnp.dot(c_t.astype(w_c.dtype), w_c,
                          preferred_element_type=jnp.float32) + b_out_ref[...]
    out_ref[...] = _selu(out)


def prepare_luong_gate_attn_params(w_in, b_in, w_out, b_out, matmul_dtype=jnp.bfloat16):
    """Pre-transpose / split / fuse the PyTorch-layout Linear weights ONCE.

    w_in: (H, H), w_out: (H, 2H) in torch Linear layout (out = x @ W^T + b).
    The two h-side projections are fused column-wise into one (H, 2H) weight so the
    kernel does a single MXU matmul on h.  bf16 (default) halves resident-weight
    DMA/VMEM and runs the v6e/v7x MXU at full rate; f32 accumulation is kept either way.
    """
    H = w_in.shape[0]
    w_in = jnp.asarray(w_in)
    w_out = jnp.asarray(w_out)
    w_h_cat = jnp.concatenate([w_in.T, w_out[:, :H].T], axis=1)     # (H, 2H)
    return {
        "w_h_cat": jnp.asarray(w_h_cat, matmul_dtype),
        "w_out_c": jnp.asarray(w_out[:, H:].T, matmul_dtype),       # (H, H) multiplies c_t
        "b_in": jnp.asarray(b_in, jnp.float32).reshape(1, H),
        "b_out": jnp.asarray(b_out, jnp.float32).reshape(1, H),
    }


def _vmem_capacity_bytes():
    try:
        return int(pltpu.get_tpu_info().vmem_capacity_bytes)
    except Exception:
        return 64 << 20          # conservative: v7x per-TC VMEM


def _pick_batch_tile(B, S, H, ctx_budget_bytes):
    """Biggest batch tile (multiple of 8, <=256) whose per-step footprint (double-buffered
    ctx + the possibly-materialized (TB,S,H) f32 reduction temporaries + small operands)
    fits the generation-aware budget, while keeping >= 2 grid steps for v7x megacore."""
    if B <= _SUBLANE:
        return B
    per_row = (4 * S * H + 6 * H + 2 * S) * 4        # f32 upper bound per batch row
    tb = max(_SUBLANE, min(256, (ctx_budget_bytes // max(per_row, 1)) // _SUBLANE * _SUBLANE))
    b_up = pl.cdiv(B, _SUBLANE) * _SUBLANE
    tb = min(tb, b_up)
    if b_up // tb < 2:                               # keep the 'parallel' axis >= 2 steps
        tb = max(_SUBLANE, (pl.cdiv(b_up, 2) // _SUBLANE) * _SUBLANE)
    return tb


def _vmem_limit_bytes(TB, S, H, ctx_bytes, w_bytes, limit_cap):
    per_step = TB * S * H * ctx_bytes + 3 * TB * H * 4 + TB * S * 4   # ctx + h/out + wts
    temps = 2 * TB * S * H * 4                                        # elementwise products
    resident = 2 * (3 * H * H * w_bytes + 2 * H * 4)                  # dbl-buffered weights/biases
    est = 2 * per_step + temps + resident + (4 << 20)                 # pipeline + headroom
    return int(min(max(est, 16 << 20), limit_cap))


def luong_gate_attn(h, context, params, *, batch_tile=None):
    """h: (B, H) f32, context: (B, S, H), params from prepare_luong_gate_attn_params.
    Returns (output (B, H) f32, weights (B, S) f32).  context is fed to the kernel in the
    params' matmul dtype (bf16 by default) to halve ctx HBM traffic; all softmax/SELU math
    stays f32 in-kernel."""
    B, H = h.shape
    S = context.shape[1]
    w_dtype = params["w_out_c"].dtype
    ctx = context.astype(w_dtype)                    # no-op when params are f32

    cap = _vmem_capacity_bytes()
    TB = batch_tile if batch_tile is not None else _pick_batch_tile(B, S, H, int(cap * 0.4))
    assert TB == B or TB % _SUBLANE == 0, "batch_tile must be a multiple of 8 or the full batch"

    # Pad only the batch (never S): zero rows are harmless (uniform softmax) and sliced off.
    B_pad = pl.cdiv(B, TB) * TB
    h_p = h if B_pad == B else jnp.pad(h, ((0, B_pad - B), (0, 0)))
    ctx_p = ctx if B_pad == B else jnp.pad(ctx, ((0, B_pad - B), (0, 0), (0, 0)))

    grid = (B_pad // TB,)
    vmem_limit = _vmem_limit_bytes(
        TB, S, H, jnp.dtype(ctx_p.dtype).itemsize, jnp.dtype(w_dtype).itemsize,
        limit_cap=int(cap * 3 // 4))

    out, wts = pl.pallas_call(
        luong_gate_attn_kernel,
        grid=grid,
        in_specs=[
            pl.BlockSpec((TB, H), lambda i: (i, 0)),          # h        (batch-tiled)
            pl.BlockSpec((TB, S, H), lambda i: (i, 0, 0)),    # context  (batch-tiled, S unpadded)
            pl.BlockSpec((H, 2 * H), lambda i: (0, 0)),       # fused h-side weight (resident)
            pl.BlockSpec((H, H), lambda i: (0, 0)),           # c_t-side weight     (resident)
            pl.BlockSpec((1, H), lambda i: (0, 0)),           # b_in                (resident)
            pl.BlockSpec((1, H), lambda i: (0, 0)),           # b_out               (resident)
        ],
        out_specs=(
            pl.BlockSpec((TB, H), lambda i: (i, 0)),          # output
            pl.BlockSpec((TB, S), lambda i: (i, 0)),          # attention weights
        ),
        out_shape=(
            jax.ShapeDtypeStruct((B_pad, H), jnp.float32),
            jax.ShapeDtypeStruct((B_pad, S), jnp.float32),
        ),
        compiler_params=pltpu.CompilerParams(
            dimension_semantics=("parallel",),
            vmem_limit_bytes=vmem_limit,
        ),
    )(h_p, ctx_p, params["w_h_cat"], params["w_out_c"], params["b_in"], params["b_out"])

    return out[:B], wts[:B]


def _reference(h, context, w_in, b_in, w_out, b_out):
    """Accurate f32 reference (HIGHEST-precision contractions)."""
    hp = lax.Precision.HIGHEST

    def selu(x):
        return SELU_SCALE * jnp.where(
            x > 0, x, SELU_ALPHA * (jnp.exp(jnp.minimum(x, 0.0)) - 1.0))

    gamma = selu(jnp.dot(h, w_in.T, precision=hp) + b_in)
    scores = jnp.einsum("bsh,bh->bs", context, gamma, precision=hp)
    w = jax.nn.softmax(scores, axis=-1)
    c_t = jnp.einsum("bs,bsh->bh", w, context, precision=hp)
    out = selu(jnp.dot(jnp.concatenate([h, c_t], axis=1), w_out.T, precision=hp) + b_out)
    return out, w


if __name__ == "__main__":
    B, S, H = 32, 8, 32
    key = jax.random.PRNGKey(0)
    k_h, k_ctx, k_wi, k_bi, k_wo, k_bo = jax.random.split(key, 6)

    h = jax.random.normal(k_h, (B, H), dtype=jnp.float32)
    context = jax.random.normal(k_ctx, (B, S, H), dtype=jnp.float32)

    # Deterministic init mirroring torch.nn.init.uniform_(-0.1, 0.1).
    initrange = 0.1
    w_in = jax.random.uniform(k_wi, (H, H), jnp.float32, -initrange, initrange)
    b_in = jax.random.uniform(k_bi, (H,), jnp.float32, -initrange, initrange)
    w_out = jax.random.uniform(k_wo, (H, 2 * H), jnp.float32, -initrange, initrange)
    b_out = jax.random.uniform(k_bo, (H,), jnp.float32, -initrange, initrange)

    ref_out, ref_wts = _reference(h, context, w_in, b_in, w_out, b_out)

    attn = jax.jit(luong_gate_attn, static_argnames=("batch_tile",))

    # 1) f32 weights + f32 context (auto batch tile -> TB=16, grid=(2,)).
    #    Tolerance budgets for the TPU default (bf16-input) MXU precision of the
    #    h-projections; the softmax itself is exact.
    params_f32 = prepare_luong_gate_attn_params(w_in, b_in, w_out, b_out, jnp.float32)
    out, wts = attn(h, context, params_f32)
    jax.block_until_ready((out, wts))
    assert out.shape == (B, H) and wts.shape == (B, S)
    assert bool(jnp.allclose(out, ref_out, atol=3e-2, rtol=3e-2))
    assert bool(jnp.allclose(wts, ref_wts, atol=3e-2, rtol=3e-2))
    assert bool(jnp.allclose(jnp.sum(wts, axis=-1), 1.0, atol=1e-5))   # exact softmax

    # 2) Default bf16 weights + bf16-fed context, explicit batch tile of 8 -> grid=(4,).
    params_bf16 = prepare_luong_gate_attn_params(w_in, b_in, w_out, b_out)
    out_bf, wts_bf = attn(h, context, params_bf16, batch_tile=8)
    jax.block_until_ready((out_bf, wts_bf))
    assert bool(jnp.allclose(out_bf, ref_out, atol=7e-2, rtol=7e-2))
    assert bool(jnp.allclose(wts_bf, ref_wts, atol=7e-2, rtol=7e-2))

    # 3) Ragged batch (B=11): exercises the batch-padding path (padded to 16, TB=8, grid=(2,)).
    out_r, wts_r = attn(h[:11], context[:11], params_bf16)
    jax.block_until_ready((out_r, wts_r))
    assert out_r.shape == (11, H) and wts_r.shape == (11, S)
    assert bool(jnp.allclose(out_r, ref_out[:11], atol=7e-2, rtol=7e-2))
    assert bool(jnp.allclose(wts_r, ref_wts[:11], atol=7e-2, rtol=7e-2))

    print("KERNEL_OK")
</pallas_src>

<mosaic_0001>
module attributes {stable_mosaic.version = 11 : i64} {
  func.func @luong_gate_attn_kernel(%arg0: i32, %arg1: memref<16x32xf32, #tpu.memory_space<vmem>>, %arg2: memref<16x8x32xf32, #tpu.memory_space<vmem>>, %arg3: memref<32x64xf32, #tpu.memory_space<vmem>>, %arg4: memref<32x32xf32, #tpu.memory_space<vmem>>, %arg5: memref<1x32xf32, #tpu.memory_space<vmem>>, %arg6: memref<1x32xf32, #tpu.memory_space<vmem>>, %arg7: memref<16x32xf32, #tpu.memory_space<vmem>>, %arg8: memref<16x8xf32, #tpu.memory_space<vmem>>) attributes {dimension_semantics = [#tpu.dimension_semantics<parallel>], iteration_bounds = array<i64: 2>, scalar_prefetch = 0 : i64, scratch_operands = 0 : i64, tpu.core_type = #tpu.core_type<tc>, window_params = [{transform_indices = @transform_0, window_bounds = array<i64: 16, 32>}, {transform_indices = @transform_1, window_bounds = array<i64: 16, 8, 32>}, {pipeline_mode = #tpu.pipeline_mode<synchronous>, transform_indices = @transform_2, window_bounds = array<i64: 32, 64>}, {pipeline_mode = #tpu.pipeline_mode<synchronous>, transform_indices = @transform_3, window_bounds = array<i64: 32, 32>}, {pipeline_mode = #tpu.pipeline_mode<synchronous>, transform_indices = @transform_4, window_bounds = array<i64: 1, 32>}, {pipeline_mode = #tpu.pipeline_mode<synchronous>, transform_indices = @transform_5, window_bounds = array<i64: 1, 32>}, {transform_indices = @transform_6, window_bounds = array<i64: 16, 32>}, {transform_indices = @transform_7, window_bounds = array<i64: 16, 8>}]} {
    %c0 = arith.constant 0 : index
    %c0_0 = arith.constant 0 : index
    %0 = vector.load %arg1[%c0, %c0_0] : memref<16x32xf32, #tpu.memory_space<vmem>>, vector<16x32xf32>
    %c0_1 = arith.constant 0 : index
    %c0_2 = arith.constant 0 : index
    %c0_3 = arith.constant 0 : index
    %1 = vector.load %arg2[%c0_1, %c0_2, %c0_3] : memref<16x8x32xf32, #tpu.memory_space<vmem>>, vector<16x8x32xf32>
    %c0_4 = arith.constant 0 : index
    %c0_5 = arith.constant 0 : index
    %2 = vector.load %arg3[%c0_4, %c0_5] : memref<32x64xf32, #tpu.memory_space<vmem>>, vector<32x64xf32>
    %cst = arith.constant dense<0.000000e+00> : vector<16x64xf32>
    %3 = tpu.matmul %0, %2, %cst {dimension_numbers = #tpu.dot_dimension_numbers<[1], [0], [0], [1], [0, 0, 1, 1], [], []>} : vector<16x32xf32>, vector<32x64xf32>, vector<16x64xf32> -> vector<16x64xf32>
    %4 = vector.extract_strided_slice %3 {offsets = [0, 0], sizes = [16, 32], strides = [1, 1]} : vector<16x64xf32> to vector<16x32xf32>
    %c0_6 = arith.constant 0 : index
    %c0_7 = arith.constant 0 : index
    %5 = vector.load %arg5[%c0_6, %c0_7] : memref<1x32xf32, #tpu.memory_space<vmem>>, vector<1x32xf32>
    %6 = vector.broadcast %5 : vector<1x32xf32> to vector<16x32xf32>
    %7 = arith.addf %4, %6 : vector<16x32xf32>
    %cst_8 = arith.constant 0.000000e+00 : f32
    %8 = vector.broadcast %cst_8 : f32 to vector<16x32xf32>
    %9 = arith.minimumf %7, %8 : vector<16x32xf32>
    %10 = math.exp %9 : vector<16x32xf32>
    %cst_9 = arith.constant 1.000000e+00 : f32
    %11 = vector.broadcast %cst_9 : f32 to vector<16x32xf32>
    %12 = arith.subf %10, %11 : vector<16x32xf32>
    %cst_10 = arith.constant 1.67326319 : f32
    %13 = vector.broadcast %cst_10 : f32 to vector<16x32xf32>
    %14 = arith.mulf %13, %12 : vector<16x32xf32>
    %cst_11 = arith.constant 0.000000e+00 : f32
    %15 = vector.broadcast %cst_11 : f32 to vector<16x32xf32>
    %16 = arith.cmpf ogt, %7, %15 : vector<16x32xf32>
    %17 = arith.select %16, %7, %14 : vector<16x32xi1>, vector<16x32xf32>
    %cst_12 = arith.constant 1.05070102 : f32
    %18 = vector.broadcast %cst_12 : f32 to vector<16x32xf32>
    %19 = arith.mulf %18, %17 : vector<16x32xf32>
    %20 = vector.extract_strided_slice %3 {offsets = [0, 32], sizes = [16, 32], strides = [1, 1]} : vector<16x64xf32> to vector<16x32xf32>
    %21 = vector.shape_cast %19 : vector<16x32xf32> to vector<16x1x32xf32>
    %22 = vector.broadcast %21 : vector<16x1x32xf32> to vector<16x8x32xf32>
    %23 = arith.mulf %1, %22 : vector<16x8x32xf32>
    %cst_13 = arith.constant dense<0.000000e+00> : vector<16x8xf32>
    %24 = vector.multi_reduction <add>, %23, %cst_13 [2] : vector<16x8x32xf32> to vector<16x8xf32>
    %cst_14 = arith.constant dense<0xFF800000> : vector<16xf32>
    %25 = vector.multi_reduction <maximumf>, %24, %cst_14 [1] : vector<16x8xf32> to vector<16xf32>
    %26 = vector.shape_cast %25 : vector<16xf32> to vector<16x1xf32>
    %27 = vector.broadcast %26 : vector<16x1xf32> to vector<16x8xf32>
    %28 = arith.subf %24, %27 : vector<16x8xf32>
    %29 = math.exp %28 : vector<16x8xf32>
    %cst_15 = arith.constant dense<0.000000e+00> : vector<16xf32>
    %30 = vector.multi_reduction <add>, %29, %cst_15 [1] : vector<16x8xf32> to vector<16xf32>
    %31 = vector.shape_cast %30 : vector<16xf32> to vector<16x1xf32>
    %32 = vector.broadcast %31 : vector<16x1xf32> to vector<16x8xf32>
    %33 = arith.divf %29, %32 : vector<16x8xf32>
    %c0_16 = arith.constant 0 : index
    %c0_17 = arith.constant 0 : index
    %34 = vector.load %arg8[%c0_16, %c0_17] : memref<16x8xf32, #tpu.memory_space<vmem>>, vector<16x8xf32>
    tpu.vector_store %arg8[%c0_16, %c0_17], %33 {strides = array<i32>} : memref<16x8xf32, #tpu.memory_space<vmem>>, vector<16x8xf32>,
    %35 = vector.shape_cast %33 : vector<16x8xf32> to vector<16x8x1xf32>
    %36 = vector.broadcast %35 : vector<16x8x1xf32> to vector<16x8x32xf32>
    %37 = arith.mulf %36, %1 : vector<16x8x32xf32>
    %cst_18 = arith.constant dense<0.000000e+00> : vector<16x32xf32>
    %38 = vector.multi_reduction <add>, %37, %cst_18 [1] : vector<16x8x32xf32> to vector<16x32xf32>
    %c0_19 = arith.constant 0 : index
    %c0_20 = arith.constant 0 : index
    %39 = vector.load %arg4[%c0_19, %c0_20] : memref<32x32xf32, #tpu.memory_space<vmem>>, vector<32x32xf32>
    %cst_21 = arith.constant dense<0.000000e+00> : vector<16x32xf32>
    %40 = tpu.matmul %38, %39, %cst_21 {dimension_numbers = #tpu.dot_dimension_numbers<[1], [0], [0], [1], [0, 0, 1, 1], [], []>} : vector<16x32xf32>, vector<32x32xf32>, vector<16x32xf32> -> vector<16x32xf32>
    %41 = arith.addf %20, %40 : vector<16x32xf32>
    %c0_22 = arith.constant 0 : index
    %c0_23 = arith.constant 0 : index
    %42 = vector.load %arg6[%c0_22, %c0_23] : memref<1x32xf32, #tpu.memory_space<vmem>>, vector<1x32xf32>
    %43 = vector.broadcast %42 : vector<1x32xf32> to vector<16x32xf32>
    %44 = arith.addf %41, %43 : vector<16x32xf32>
    %cst_24 = arith.constant 0.000000e+00 : f32
    %45 = vector.broadcast %cst_24 : f32 to vector<16x32xf32>
    %46 = arith.minimumf %44, %45 : vector<16x32xf32>
    %47 = math.exp %46 : vector<16x32xf32>
    %cst_25 = arith.constant 1.000000e+00 : f32
    %48 = vector.broadcast %cst_25 : f32 to vector<16x32xf32>
    %49 = arith.subf %47, %48 : vector<16x32xf32>
    %cst_26 = arith.constant 1.67326319 : f32
    %50 = vector.broadcast %cst_26 : f32 to vector<16x32xf32>
    %51 = arith.mulf %50, %49 : vector<16x32xf32>
    %cst_27 = arith.constant 0.000000e+00 : f32
    %52 = vector.broadcast %cst_27 : f32 to vector<16x32xf32>
    %53 = arith.cmpf ogt, %44, %52 : vector<16x32xf32>
    %54 = arith.select %53, %44, %51 : vector<16x32xi1>, vector<16x32xf32>
    %cst_28 = arith.constant 1.05070102 : f32
    %55 = vector.broadcast %cst_28 : f32 to vector<16x32xf32>
    %56 = arith.mulf %55, %54 : vector<16x32xf32>
    %c0_29 = arith.constant 0 : index
    %c0_30 = arith.constant 0 : index
    %57 = vector.load %arg7[%c0_29, %c0_30] : memref<16x32xf32, #tpu.memory_space<vmem>>, vector<16x32xf32>
    tpu.vector_store %arg7[%c0_29, %c0_30], %56 {strides = array<i32>} : memref<16x32xf32, #tpu.memory_space<vmem>>, vector<16x32xf32>,
    return
  }
  func.func @transform_0(%arg0: i32) -> (i32, i32) {
    %c0_i32 = arith.constant 0 : i32
    %c0_i32_0 = arith.constant 0 : i32
    return %arg0, %c0_i32 : i32, i32
  }
  func.func @transform_1(%arg0: i32) -> (i32, i32, i32) {
    %c0_i32 = arith.constant 0 : i32
    %c0_i32_0 = arith.constant 0 : i32
    %c0_i32_1 = arith.constant 0 : i32
    return %arg0, %c0_i32, %c0_i32_0 : i32, i32, i32
  }
  func.func @transform_2(%arg0: i32) -> (i32, i32) {
    %c0_i32 = arith.constant 0 : i32
    %c0_i32_0 = arith.constant 0 : i32
    %c0_i32_1 = arith.constant 0 : i32
    return %c0_i32, %c0_i32_0 : i32, i32
  }
  func.func @transform_3(%arg0: i32) -> (i32, i32) {
    %c0_i32 = arith.constant 0 : i32
    %c0_i32_0 = arith.constant 0 : i32
    %c0_i32_1 = arith.constant 0 : i32
    return %c0_i32, %c0_i32_0 : i32, i32
  }
  func.func @transform_4(%arg0: i32) -> (i32, i32) {
    %c0_i32 = arith.constant 0 : i32
    %c0_i32_0 = arith.constant 0 : i32
    %c0_i32_1 = arith.constant 0 : i32
    return %c0_i32, %c0_i32_0 : i32, i32
  }
  func.func @transform_5(%arg0: i32) -> (i32, i32) {
    %c0_i32 = arith.constant 0 : i32
    %c0_i32_0 = arith.constant 0 : i32
    %c0_i32_1 = arith.constant 0 : i32
    return %c0_i32, %c0_i32_0 : i32, i32
  }
  func.func @transform_6(%arg0: i32) -> (i32, i32) {
    %c0_i32 = arith.constant 0 : i32
    %c0_i32_0 = arith.constant 0 : i32
    return %arg0, %c0_i32 : i32, i32
  }
  func.func @transform_7(%arg0: i32) -> (i32, i32) {
    %c0_i32 = arith.constant 0 : i32
    %c0_i32_0 = arith.constant 0 : i32
    return %arg0, %c0_i32 : i32, i32
  }
}

</mosaic_0001>

<bundles_post_ra>
// kernel: luong_gate_attn.1
= control target key start
LH: loop header
LB: loop body
LE: loop exit
PB: predicated region body
PF: predicated region fallthrough
CT: control target
= control target key end

     0   :  { %s2996_s0 = inlined_call_operand.hbm [shape: f32[32,32], index: 0, kind: input, shape index: {}]   ;;  %s2997_s1 = inlined_call_operand.hbm [shape: f32[32,8,32], index: 1, kind: input, shape index: {}]   ;;  %s2998_s2 = inlined_call_operand.hbm [shape: f32[32,64], index: 2, kind: input, shape index: {}]   ;;  %s2999_s3 = inlined_call_operand.hbm [shape: f32[32,32], index: 3, kind: input, shape index: {}]   ;;  %s3000_s4 = inlined_call_operand.vmem [shape: f32[1,32], index: 4, kind: input, shape index: {}]   ;;  %s3001_s5 = inlined_call_operand.vmem [shape: f32[1,32], index: 5, kind: input, shape index: {}]   ;;  %s3002_s6 = inlined_call_operand.hbm [shape: f32[32,32], index: 6, kind: output, shape index: {0}]   ;;  %s3003_s7 = inlined_call_operand.vmem [shape: f32[32,8], index: 7, kind: output, shape index: {1}]  }
   0x1   :  { %3021 = sst [smem:[#allocation20_spill]] %s2998_s2 }
   0x2   :  { %3022 = sst [smem:[#allocation21_spill]] %s2999_s3 }
   0x3   :  { %13 = vsyncpa [#allocation3], 0 }
   0x4   :  { %15 = vsyncpa [#allocation3 + $0x1], 0 }
   0x5   :  { %16 = vsyncpa [#allocation6], 0 }
   0x6   :  { %18 = vsyncpa [#allocation6 + $0x1], 0 }
   0x7   :  { %19 = vsyncpa [#allocation9], 0 }
   0x8   :  { %20 = vsyncpa [#allocation4], 0 }
   0x9   :  { %22 = vsyncpa [#allocation4 + $0x1], 0  ;;  %s2075_s24 = smov 0   ;;  %s2077_s25 = smov 0  }
   0xa   :  { %s2079_s26 = smov 0   ;;  %s2081_s27 = smov 0  }
   0xb LB: > { %3023 = sst [smem:[#allocation16_spill]] %s2020_s26  ;;  %s2096_s28 = sadd.s32 4294967295, %s2024_s27   ;;  %s2024_s27 = sphi %s2081_s27, %s3109_s27   ;;  %s2020_s26 = sphi %s2079_s26, %s3114_s26   ;;  %s2016_s25 = sphi %s2077_s25, %s3113_s25   ;;  %s2012_s24 = sphi %s2075_s24, %s3112_s24  }
   0xc   : > { %s1611_s29 = sadd.s32 4294967294, %s2024_s27   ;;  %p48_p0 = scmp.ne.s32.totalorder %s2016_s25, %s2012_s24 }
   0xd   : > { %p49_p1 = scmp.eq.s32.totalorder %s2096_s28, 0  ;;  %p182_p2 = scmp.eq.s32.totalorder %s2096_s28, 1 }
   0xe   : > { %p188_p3 = scmp.eq.s32.totalorder %s1611_s29, 1  ;;  %p1612_p5 = scmp.ge.s32.totalorder %s2024_s27, 1 }
   0xf   : > { %p2105_p4 = por %p49_p1, %p48_p0  ;;  %p221_p7 = scmp.lt.s32.totalorder %s2024_s27, 3 }
  0x10   : > { %p2110_p6 = por %p188_p3, %p48_p0  ;;  %s3027_s2 = sld [smem:[#allocation20_spill]] }
  0x11   : > { %p2118_p8 = pnand %p1612_p5, %p221_p7  ;;  %s2026_s13 = smov [#allocation7]  }
  0x12   : > { %s3025_s8 = scalar_select %p2110_p6, 1, 0 }
  0x13   : > { %p1668_p9 = pneg %p2118_p8  ;;  %s234_s14 = sshll.u32 %s2026_s13, 4  ;;  %s235_s14 = int_to_ptr.vmem [resolvable:$true] %s234_s14 }
  0x14   : > { %3026 = sst [smem:[#allocation17_spill]] %s3025_s8  ;;  %s3004_s18 = smov 128  }
  0x15   : > { %p1669_p10 = pnand %p1668_p9, %p49_p1  ;;  %s3029_s3 = sld [smem:[#allocation21_spill]] }
  0x16   : > { %s232_s11 = sshll.u32 %s3027_s2, 4  ;;  %s3006_s19 = smov 8   ;;  %s233_s11 = int_to_ptr.hbm [resolvable:$true] %s232_s11 }
  0x17   : > { %1671 = dma.hbm_to_vmem [thread:$0]  (!%p1669_p10), %s233_s11, 512, %s235_s14, [#allocation6], %s3004_s18, %s3004_s18, %s3006_s19  }
  0x18   : > { %s2029_s20 = smov [#allocation8]   ;;  %s2137_s22 = sadd.s32 1, %s2024_s27  }
  0x19   : > { %s248_s21 = sshll.u32 %s2029_s20, 4  ;;  %3030 = sst [smem:[#allocation18_spill]] %s2137_s22  ;;  %s249_s21 = int_to_ptr.vmem [resolvable:$true] %s248_s21 }
  0x1a   : > { %s35_s23 = sadd.s32 1, %s2020_s26  ;;  %s32_s29 = ssub.s32 %s2024_s27, %s2137_s22 }
  0x1b   : > { %s246_s17 = sshll.u32 %s3029_s3, 4  ;;  %p42_p12 = scmp.ne.s32.totalorder %s2020_s26, %s2016_s25  ;;  %s247_s17 = int_to_ptr.hbm [resolvable:$true] %s246_s17 }
  0x1c   : > { %1674 = dma.hbm_to_vmem [thread:$0]  (!%p1669_p10), %s247_s17, 512, %s249_s21, [#allocation9], %s3004_s18, %s3004_s18, %s3006_s19  }
  0x1d   : > { %p33_p13 = scmp.eq.s32.totalorder %s32_s29, 0  ;;  %p43_p0 = scmp.eq.s32.totalorder %s2024_s27, 0 }
  0x1e   : > { %p2147_p3 = por %p182_p2, %p42_p12  ;;  %p1688_p5 = scmp.lt.s32.totalorder %s2024_s27, 2 }
  0x1f   : > { %s2153_s10 = scalar_select %p33_p13, %s2020_s26, %s35_s23  }
  0x20   : > { %p44_p7 = por %p43_p0, %p42_p12  ;;  %s2156_s11 = sand.u32 1, %s2020_s26  }
  0x21   : > { %3032 = sst [smem:[#allocation19_spill]] %s2153_s10  ;;  %s1616_s13 = sshll.u32 %s2156_s11, 4 }
  0x22   : > { %s1643_s14 = sshll.u32 %s2024_s27, 4  ;;  %s272_s20 = scalar_lea.vmem [#allocation2], %s1616_s13 }
  0x23   : > { %s277_s17 = scalar_lea.hbm %s2996_s0, %s1643_s14  ;;  %s280_s21 = sshll.u32 %s272_s20, 4  ;;  %s281_s21 = int_to_ptr.vmem [resolvable:$true] %s280_s21 }
  0x24   : > { %s278_s29 = sshll.u32 %s277_s17, 4  ;;  %p2163_p2 = pnand %p1688_p5, %p44_p7  ;;  %s279_s29 = int_to_ptr.hbm [resolvable:$true] %s278_s29 }
  0x25   : > { %s290_s18 = sand.u32 1, %s2024_s27   ;;  %s1619_s19 = sshll.u32 %s2156_s11, 7 }
  0x26   : > { %s269_s2 = scalar_lea.sflag [#allocation3], %s2156_s11  ;;  %s1886_s3 = sshra.s32 %s279_s29, 4  ;;  %s1887_s3 = int_to_ptr.hbm [resolvable:$true] %s1886_s3 }
  0x27   : > { %s1888_s10 = scalar_lea.hbm %s1887_s3, 16  ;;  %p1890_p10 = pneg %p2163_p2 }
  0x28   : > { %p1889_p9 = scmp.ne.s32.totalorder %s1887_s3, %s1888_s10  ;;  %s1893_s15 = scalar_lea.hbm %s2996_s0, 32 }
  0x29   : > { %p1894_p0 = scmp.lt.s32.totalorder %s1887_s3, %s2996_s0  ;;  %p1895_p5 = scmp.lt.s32.totalorder %s1893_s15, %s1888_s10 }
  0x2a   : > { %p1891_p12 = pnand %p1890_p10, %p1889_p9 }
  0x2b   : > { %p1896_p7 = por %p1895_p5, %p1894_p0 }
  0x2c   : > { %p1892_p13 = pneg %p1891_p12 }
  0x2e   : > { %p1897_p11 = pnand %p1896_p7, %p1892_p13 }
  0x30   : > { %1900 = shalt.err (!%p1897_p11)
}
  0x31   : > { %s3034_s11 = smov 8   ;;  %s3035_s20 = smov 128  }
  0x32   : > { %1678 = dma.hbm_to_vmem [thread:$0]  (!%p2163_p2), %s279_s29, 256, %s281_s21, %s269_s2, %s3035_s20, %s3035_s20, %s3034_s11  }
  0x33   : > { %s1644_s26 = sshll.u32 %s2024_s27, 7  ;;  %s294_s8 = scalar_lea.vmem [#allocation5], %s1619_s19 }
  0x34   : > { %s299_s14 = scalar_lea.hbm %s2997_s1, %s1644_s26  ;;  %s302_s16 = sshll.u32 %s294_s8, 4  ;;  %s303_s16 = int_to_ptr.vmem [resolvable:$true] %s302_s16 }
  0x35   : > { %s300_s3 = sshll.u32 %s299_s14, 4  ;;  %s291_s10 = scalar_lea.sflag [#allocation6], %s290_s18  ;;  %s301_s3 = int_to_ptr.hbm [resolvable:$true] %s300_s3 }
  0x36   : > { %s1916_s15 = sshra.s32 %s301_s3, 4  ;;  %s1923_s29 = scalar_lea.hbm %s2997_s1, 256  ;;  %s1917_s15 = int_to_ptr.hbm [resolvable:$true] %s1916_s15 }
  0x37   : > { %s1918_s17 = scalar_lea.hbm %s1917_s15, 128  ;;  %p1924_p13 = scmp.lt.s32.totalorder %s1917_s15, %s2997_s1 }
  0x38   : > { %p1919_p11 = scmp.ne.s32.totalorder %s1917_s15, %s1918_s17  ;;  %p1925_p0 = scmp.lt.s32.totalorder %s1923_s29, %s1918_s17 }
  0x3a   : > { %p1921_p9 = pnand %p1919_p11, %p1890_p10  ;;  %p1926_p5 = por %p1925_p0, %p1924_p13 }
  0x3c   : > { %p1922_p12 = pneg %p1921_p9 }
  0x3e   : > { %p1927_p7 = pnand %p1926_p5, %p1922_p12 }
  0x40   : > { %1930 = shalt.err (!%p1927_p7)
}
  0x41   : > { %1681 = dma.hbm_to_vmem [thread:$0]  (!%p2163_p2), %s301_s3, 2048, %s303_s16, %s291_s10, %s3035_s20, %s3035_s20, %s3034_s11  }
  0x42   : > { %314 = sbr.rel (%p2118_p8) target bundleno = 1414 (0x586), region = 44  ;;  %s2207_s8 = sand.u32 (!%p2118_p8), 1, %s2016_s25  }
  0x43   : > { %s1623_s18 = sshll.u32 (!%p2118_p8), %s2207_s8, 4  ;;  %s317_s19 = scalar_lea.sflag (!%p2118_p8), [#allocation3], %s2207_s8 }
  0x44   : > { %s320_s13 = scalar_lea.vmem (!%p2118_p8), [#allocation2], %s1623_s18 }
  0x47   : > { %1991 = dma.done.wait (%p2105_p4), %s317_s19, 256  }
  0x48   : > { %1993 = vsyncadd (%p2105_p4), %s317_s19, 4294967040  ;;  %s326_s12 = sand.u32 1, %s2096_s28   ;;  %s1624_s23 = sshll.u32 %s2207_s8, 7 }
  0x49   : > { %s327_s11 = scalar_lea.sflag [#allocation6], %s326_s12  ;;  %s2219_s20 = scalar_lea.vmem [#allocation5], %s1624_s23 }
  0x4a   : > { %1995 = dma.done.wait (%p2105_p4), %s327_s11, 2048  }
  0x4b   : > { %1997 = vsyncadd (%p2105_p4), %s327_s11, 4294965248 }
  0x4c   : > { %1999 = dma.done.wait (%p49_p1), [#allocation6], 512  }
  0x4d   : > { %2001 = vsyncadd (%p49_p1), [#allocation6], 4294966784 }
  0x4e   : > { %2003 = dma.done.wait (%p49_p1), [#allocation9], 512  }
  0x4f   : > { %2005 = vsyncadd (%p49_p1), [#allocation9], 4294966784  ;;  %v412_v0 = vld [vmem:[#allocation7 + $0x18] sm:$0xff]  ;;  %v411_v1 = vld [vmem:[#allocation7 + $0x10] sm:$0xff]  ;;  %vm3020_vm0 = vcmask 261120   ;;  %vm3019_vm3 = vcmask 1041409  }
  0x50   : > { %432 = vmatpush.msra.mxu0 %v412_v0  ;;  %1646 = vmatpush.msra.mxu2 %v412_v0  ;;  %v410_v2 = vld [vmem:[#allocation7 + $0x8] sm:$0xff]  ;;  %v409_v3 = vld [vmem:[#allocation7] sm:$0xff]  ;;  %v395_v40 = vld [vmem:[%s2219_s20 + $0x10] sm:$0xff]  ;;  %vm3018_vm4 = vcmask 1042434   ;;  %vm3017_vm5 = vcmask 1043459   ;;  %vm3016_vm6 = vcmask 1044484  }
  0x51   : > { %v391_v4 = vld [vmem:[%s320_s13] sm:$0xff]  ;;  %v392_v5 = vld [vmem:[%s320_s13 + $0x8] sm:$0xff]  ;;  %vm3015_vm7 = vcmask 1045509   ;;  %vm3014_vm8 = vcmask 1046534   ;;  %vm3013_vm9 = vcmask 1047559   ;;  %vm3012_vm10 = vcmask 64512  }
  0x52   : > { %433 = vmatpush.msra.mxu0 %v411_v1  ;;  %1647 = vmatpush.msra.mxu2 %v411_v1  ;;  %v1736_v6 = vld [vmem:[%s3000_s4] ss:$0 sm:$0xff]  ;;  %v394_v29 = vld [vmem:[%s2219_s20 + $0x8] sm:$0xff]  ;;  %v396_v46 = vld [vmem:[%s2219_s20 + $0x18] sm:$0xff]  ;;  %s1628_s16 = sshll.u32 %s2096_s28, 1  ;;  %s2031_s22 = smov 32  }
  0x53   : > { %v393_v22 = vld [vmem:[%s2219_s20] sm:$0xff]  ;;  %v403_v55 = vld [vmem:[%s2219_s20 + $0x50] sm:$0xff]  ;;  %v402_v60 = vld [vmem:[%s2219_s20 + $0x48] sm:$0xff]  ;;  %p2876_p1 = scmp.lt.s32.totalorder %s1628_s16, 3  ;;  %s2032_s26 = smov 96  }
  0x54   : > { %434 = vmatpush.msra.mxu0 %v410_v2  ;;  %1648 = vmatpush.msra.mxu2 %v410_v2  ;;  %v397_v28 = vld [vmem:[%s2219_s20 + $0x20] sm:$0xff]  ;;  %s1645_s19 = sshll.u32 %s2096_s28, 4  ;;  %s374_s11 = scalar_lea.vmem [#allocation10], %s1623_s18 }
  0x55   : > { %v401_v45 = vld [vmem:[%s2219_s20 + $0x40] sm:$0xff]  ;;  %s3116_s16 = smov (!%p2876_p1, %s1628_s16), 3  ;;  %s1463_s23 = scalar_lea.hbm %s3002_s6, %s1645_s19 }
  0x56   : > { %435 = vmatpush.msra.mxu0 %v409_v3  ;;  %1649 = vmatpush.msra.mxu2 %v409_v3  ;;  %v405_v61 = vld [vmem:[%s2219_s20 + $0x60] sm:$0xff]  ;;  %s1629_s10 = sshll.u32 %s3116_s16, 3  ;;  %s1466_s30 = sshll.u32 %s1463_s23, 4  ;;  %s1467_s30 = int_to_ptr.hbm [resolvable:$true] %s1466_s30 }
  0x57   : > { %1630 = vmatmul.msk.f32.vlgmr.msra.gmra.mxu0 %vm3020_vm0, %v391_v4  ;;  %1631 = vmatmul.msk.f32.vlgmr.msra.gmra.mxu2 %vm3020_vm0, %v392_v5  ;;  %s389_s2 = scalar_lea.vmem %s3003_s7, %s1629_s10  ;;  %s1447_s14 = scalar_lea.sflag [#allocation4], %s2207_s8 }
  0x58   : > { %s1960_s16 = sshra.s32 %s1467_s30, 4  ;;  %s1966_s10 = scalar_lea.hbm %s3002_s6, 32  ;;  %s1961_s16 = int_to_ptr.hbm [resolvable:$true] %s1960_s16 }
  0x59   : > { %s1962_s28 = scalar_lea.hbm %s1961_s16, 16  ;;  %p1967_p10 = scmp.lt.s32.totalorder %s1961_s16, %s3002_s6 }
  0x5a   : > { %p1963_p4 = scmp.ne.s32.totalorder %s1961_s16, %s1962_s28  ;;  %p1968_p11 = scmp.lt.s32.totalorder %s1966_s10, %s1962_s28 }
  0x5c   : > { %p1964_p8 = pnand %p1963_p4, %p2147_p3  ;;  %p1969_p9 = por %p1968_p11, %p1967_p10 }
  0x5e   : > { %p1965_p2 = pneg %p1964_p8 }
  0x60   : > { %p1970_p12 = pnand %p1969_p9, %p1965_p2 }
  0xd4   : > { %v2238_v7 = vpop.f32.mrf.mxu0 }
  0xd5   : > { %v447_v8 = vadd.f32 %v1736_v6, %v2238_v7 }
  0xd7   : > { %v449_v9 = vmin.f32 %v447_v8, 0.0  ;;  %vm459_vm1 = vcmp.gt.f32.partialorder %v447_v8, 0.0 }
  0xd9   : > { %v451_v10 = vmul.f32 1.442695, %v449_v9 }
  0xda   : > { %v2241_v11 = vpop.f32.mrf.mxu2 }
  0xdb   : > { %1738 = vpow2.f32 %v451_v10  ;;  %v448_v12 = vadd.f32 %v1736_v6, %v2241_v11  ;;  %v404_v6 = vld [vmem:[%s2219_s20 + $0x58] sm:$0xff] }
  0xdd   : > { %v450_v13 = vmin.f32 %v448_v12, 0.0  ;;  %vm460_vm2 = vcmp.gt.f32.partialorder %v448_v12, 0.0 }
  0xdf   : > { %v453_v14 = vmul.f32 1.442695, %v450_v13  ;;  %v407_v13 = vld [vmem:[%s2219_s20 + $0x70] sm:$0xff] }
  0xe1   : > { %v1739_v15 = vpop.eup %1738  ;;  %1740 = vpow2.f32 %v453_v14  ;;  %v406_v14 = vld [vmem:[%s2219_s20 + $0x68] sm:$0xff] }
  0xe2   : > { %v1632_v16 = vadd.f32 -1.0, %v1739_v15 }
  0xe4   : > { %v457_v17 = vmul.f32 1.6732632, %v1632_v16 }
  0xe6   : > { %v461_v18 = vsel %vm459_vm1, %v447_v8, %v457_v17 }
  0xe7   : > { %v1741_v19 = vpop.eup %1740  ;;  %v2244_v20 = vmul.f32 1.050701, %v461_v18 }
  0xe8   : > { %v1633_v21 = vadd.f32 -1.0, %v1741_v19 }
  0xe9   : > { %v481_v23 = vperm.slane %v2244_v20, 0  ;;  %v470_v24 = vrot.slane %v2244_v20, 4  ;;  %v467_v25 = vrot.slane %v2244_v20, 1  ;;  %v468_v26 = vrot.slane %v2244_v20, 2 }
  0xea   : > { %v458_v27 = vmul.f32 1.6732632, %v1633_v21  ;;  %v469_v33 = vrot.slane %v2244_v20, 3  ;;  %v471_v16 = vrot.slane %v2244_v20, 5  ;;  %v472_v21 = vrot.slane %v2244_v20, 6 }
  0xeb   : > { %v513_v30 = vmul.f32 %v481_v23, %v393_v22  ;;  %v485_v31 = vperm.slane %v470_v24, 0  ;;  %v482_v32 = vperm.slane %v467_v25, 0  ;;  %v483_v35 = vperm.slane %v468_v26, 0  ;;  %v398_v24 = vld [vmem:[%s2219_s20 + $0x28] sm:$0xff] }
  0xec   : > { %v462_v34 = vsel %vm460_vm2, %v448_v12, %v458_v27  ;;  %v484_v44 = vperm.slane %v469_v33, 0  ;;  %v486_v23 = vperm.slane %v471_v16, 0 }
  0xed   : > { %v464_v36 = vmul.f32 1.050701, %v462_v34  ;;  %v529_v37 = vsel %vm3020_vm0, %v513_v30, 0.0  ;;  %v517_v38 = vmul.f32 %v485_v31, %v397_v28  ;;  %v514_v39 = vmul.f32 %v482_v32, %v394_v29  ;;  %v408_v29 = vld [vmem:[%s2219_s20 + $0x78] sm:$0xff]  ;;  %v399_v30 = vld [vmem:[%s2219_s20 + $0x30] sm:$0xff] }
  0xee   : > { %530 = vadd.xlane.f32.xlu1 %v529_v37  ;;  %v515_v47 = vmul.f32 %v483_v35, %v395_v40  ;;  %v516_v50 = vmul.f32 %v484_v44, %v396_v46  ;;  %v487_v28 = vperm.slane %v472_v21, 0  ;;  %v518_v31 = vmul.f32 %v486_v23, %v398_v24 }
  0xef   : > { %v541_v41 = vsel %vm3020_vm0, %v517_v38, 0.0  ;;  %v532_v42 = vsel %vm3020_vm0, %v514_v39, 0.0  ;;  %v489_v43 = vperm.slane %v464_v36, 0  ;;  %v475_v48 = vrot.slane %v464_v36, 2  ;;  %v400_v39 = vld [vmem:[%s2219_s20 + $0x38] sm:$0xff] }
  0xf0   : > { %542 = vadd.xlane.f32.xlu0 %v541_v41  ;;  %533 = vadd.xlane.f32.xlu2 %v532_v42  ;;  %v474_v51 = vrot.slane %v464_v36, 1  ;;  %v477_v52 = vrot.slane %v464_v36, 4  ;;  %v535_v53 = vsel %vm3020_vm0, %v515_v47, 0.0  ;;  %v538_v57 = vsel %vm3020_vm0, %v516_v50, 0.0 }
  0xf1   : > { %v521_v49 = vmul.f32 %v489_v43, %v401_v45  ;;  %v491_v54 = vperm.slane %v475_v48, 0  ;;  %v476_v63 = vrot.slane %v464_v36, 3  ;;  %v479_v2 = vrot.slane %v464_v36, 6 }
  0xf2   : > { %v490_v58 = vperm.slane %v474_v51, 0  ;;  %v493_v59 = vperm.slane %v477_v52, 0  ;;  %v478_v3 = vrot.slane %v464_v36, 5  ;;  %v480_v19 = vrot.slane %v464_v36, 7 }
  0xf3   : > { %v553_v56 = vsel %vm3020_vm0, %v521_v49, 0.0  ;;  %v523_v62 = vmul.f32 %v491_v54, %v403_v55  ;;  %v492_v5 = vperm.slane %v476_v63, 0  ;;  %v495_v10 = vperm.slane %v479_v2, 0 }
  0xf4   : > { %v522_v0 = vmul.f32 %v490_v58, %v402_v60  ;;  %v525_v1 = vmul.f32 %v493_v59, %v405_v61  ;;  %v494_v12 = vperm.slane %v478_v3, 0  ;;  %v496_v27 = vperm.slane %v480_v19, 0 }
  0xf5   : > { %v559_v4 = vsel %vm3020_vm0, %v523_v62, 0.0  ;;  %v524_v15 = vmul.f32 %v492_v5, %v404_v6  ;;  %v527_v17 = vmul.f32 %v495_v10, %v407_v13  ;;  %v519_v33 = vmul.f32 %v487_v28, %v399_v30 }
  0xf6   : > { %536 = vadd.xlane.f32.xlu1 %v535_v53  ;;  %v556_v8 = vsel %vm3020_vm0, %v522_v0, 0.0  ;;  %v565_v9 = vsel %vm3020_vm0, %v525_v1, 0.0  ;;  %v526_v18 = vmul.f32 %v494_v12, %v406_v14  ;;  %v528_v32 = vmul.f32 %v496_v27, %v408_v29 }
  0xf7   : > { %v562_v22 = vsel %vm3020_vm0, %v524_v15, 0.0  ;;  %v571_v25 = vsel %vm3020_vm0, %v527_v17, 0.0  ;;  %v473_v34 = vrot.slane %v2244_v20, 7  ;;  %v544_v35 = vsel %vm3020_vm0, %v518_v31, 0.0 }
  0xf8   : > { %554 = vadd.xlane.f32.xlu0 %v553_v56  ;;  %539 = vadd.xlane.f32.xlu2 %v538_v57  ;;  %v568_v26 = vsel %vm3020_vm0, %v526_v18, 0.0  ;;  %v574_v36 = vsel %vm3020_vm0, %v528_v32, 0.0  ;;  %v547_v37 = vsel %vm3020_vm0, %v519_v33, 0.0  ;;  %v593_v47 = vlaneseq }
  0xf9   : > { %v488_v38 = vperm.slane %v473_v34, 0  ;;  %v2030_v30 = vmov 0  }
  0xfa   : > { %v2300_v49 = vand.u32 127, %v593_v47  ;;  %1735 = vset.pattern.permute.xlu1 %v2030_v30  ;;  %1734 = vset.pattern.permute.xlu2 %v2030_v30 }
  0xfb   : > { %v520_v40 = vmul.f32 %v488_v38, %v400_v39  ;;  %1733 = vset.pattern.permute.xlu0 %v2030_v30 }
  0xfd   : > { %v550_v41 = vsel %vm3020_vm0, %v520_v40, 0.0 }
  0xfe   : > { %560 = vadd.xlane.f32.xlu1 %v559_v4 }
 0x100   : > { %557 = vadd.xlane.f32.xlu0 %v556_v8  ;;  %566 = vadd.xlane.f32.xlu2 %v565_v9 }
 0x106   : > { %563 = vadd.xlane.f32.xlu1 %v562_v22 }
 0x108   : > { %572 = vadd.xlane.f32.xlu0 %v571_v25  ;;  %569 = vadd.xlane.f32.xlu2 %v568_v26 }
 0x10e   : > { %545 = vadd.xlane.f32.xlu1 %v544_v35 }
 0x110   : > { %575 = vadd.xlane.f32.xlu0 %v574_v36  ;;  %548 = vadd.xlane.f32.xlu2 %v547_v37 }
 0x118   : > { %551 = vadd.xlane.f32.xlu0 %v550_v41 }
 0x161   : > { %v2286_v42 = vpop.xlane.xlu1 %530 }
 0x162   : > { %v595_v3 = vperm.slane %v2286_v42, %v2300_v49 }
 0x163   : > { %v2288_v43 = vpop.xlane.xlu0 %542  ;;  %v2290_v20 = vpop.xlane.xlu2 %533 }
 0x164   : > { %v596_v63 = vperm.slane %v2290_v20, %v2300_v49  ;;  %v599_v19 = vperm.slane %v2288_v43, %v2300_v49 }
 0x166   : > { %v612_v5 = vsel %vm3019_vm3, %v596_v63, %v595_v3 }
 0x169   : > { %v2292_v44 = vpop.xlane.xlu1 %536 }
 0x16a   : > { %v597_v1 = vperm.slane %v2292_v44, %v2300_v49 }
 0x16b   : > { %v2294_v45 = vpop.xlane.xlu0 %554  ;;  %v2296_v46 = vpop.xlane.xlu2 %539 }
 0x16c   : > { %v603_v53 = vperm.slane %v2294_v45, %v2300_v49  ;;  %v598_v6 = vperm.slane %v2296_v46, %v2300_v49  ;;  %v614_v9 = vsel %vm3018_vm4, %v597_v1, %v612_v5 }
 0x16e   : > { %v616_v15 = vsel %vm3017_vm5, %v598_v6, %v614_v9 }
 0x16f   : > { %v618_v23 = vsel %vm3016_vm6, %v599_v19, %v616_v15 }
 0x171   : > { %v2298_v48 = vpop.xlane.xlu1 %560 }
 0x172   : > { %v605_v55 = vperm.slane %v2298_v48, %v2300_v49 }
 0x173   : > { %v2302_v50 = vpop.xlane.xlu0 %557  ;;  %v2304_v51 = vpop.xlane.xlu2 %566 }
 0x174   : > { %v604_v52 = vperm.slane %v2302_v50, %v2300_v49  ;;  %v607_v62 = vperm.slane %v2304_v51, %v2300_v49 }
 0x176   : > { %v625_v54 = vsel %vm3019_vm3, %v604_v52, %v603_v53 }
 0x177   : > { %v626_v58 = vsel %vm3018_vm4, %v605_v55, %v625_v54 }
 0x179   : > { %v2313_v56 = vpop.xlane.xlu1 %563 }
 0x17a   : > { %v606_v57 = vperm.slane %v2313_v56, %v2300_v49 }
 0x17b   : > { %v2318_v59 = vpop.xlane.xlu0 %572  ;;  %v2320_v60 = vpop.xlane.xlu2 %569 }
 0x17c   : > { %v627_v61 = vsel %vm3017_vm5, %v606_v57, %v626_v58  ;;  %v608_v0 = vperm.slane %v2320_v60, %v2300_v49  ;;  %v609_v4 = vperm.slane %v2318_v59, %v2300_v49 }
 0x17d   : > { %v628_v2 = vsel %vm3016_vm6, %v607_v62, %v627_v61 }
 0x17e   : > { %v629_v8 = vsel %vm3015_vm7, %v608_v0, %v628_v2 }
 0x17f   : > { %v630_v14 = vsel %vm3014_vm8, %v609_v4, %v629_v8 }
 0x181   : > { %v2341_v10 = vpop.xlane.xlu1 %545 }
 0x182   : > { %v600_v16 = vperm.slane %v2341_v10, %v2300_v49 }
 0x183   : > { %v2343_v12 = vpop.xlane.xlu0 %575  ;;  %v2351_v17 = vpop.xlane.xlu2 %548 }
 0x184   : > { %v610_v13 = vperm.slane %v2343_v12, %v2300_v49  ;;  %v601_v22 = vperm.slane %v2351_v17, %v2300_v49  ;;  %v620_v24 = vsel %vm3015_vm7, %v600_v16, %v618_v23 }
 0x186   : > { %v631_v18 = vsel %vm3013_vm9, %v610_v13, %v630_v14  ;;  %v622_v27 = vsel %vm3014_vm8, %v601_v22, %v620_v24 }
 0x187   : > { %v638_v21 = vsel %vm3012_vm10, %v631_v18, -inf }
 0x188   : > { %639 = vmax.xlane.f32.xlu1 %v638_v21 }
 0x18b   : > { %v2361_v25 = vpop.xlane.xlu0 %551 }
 0x18c   : > { %v602_v26 = vperm.slane %v2361_v25, %v2300_v49 }
 0x18e   : > { %v624_v28 = vsel %vm3013_vm9, %v602_v26, %v622_v27 }
 0x18f   : > { %v635_v29 = vsel %vm3012_vm10, %v624_v28, -inf }
 0x190   : > { %636 = vmax.xlane.f32.xlu2 %v635_v29 }
 0x1fb   : > { %v2368_v31 = vpop.xlane.xlu1 %639 }
 0x1fc   : > { %v652_v39 = vperm.slane %v2368_v31, 1  ;;  %v651_v41 = vperm.slane %v2368_v31, 0  ;;  %v653_v58 = vperm.slane %v2368_v31, 2  ;;  %v657_v3 = vperm.slane %v2368_v31, 6 }
 0x1fd   : > { %v654_v5 = vperm.slane %v2368_v31, 3  ;;  %v658_v16 = vperm.slane %v2368_v31, 7  ;;  %v656_v19 = vperm.slane %v2368_v31, 5 }
 0x1fe   : > { %v684_v54 = vsub.f32 %v2302_v50, %v652_v39 }
 0x203   : > { %v2370_v32 = vpop.xlane.xlu2 %636 }
 0x204   : > { %v647_v33 = vperm.slane %v2370_v32, 4  ;;  %v644_v34 = vperm.slane %v2370_v32, 1  ;;  %v643_v35 = vperm.slane %v2370_v32, 0  ;;  %v646_v40 = vperm.slane %v2370_v32, 3 }
 0x205   : > { %v645_v63 = vperm.slane %v2370_v32, 2  ;;  %v648_v9 = vperm.slane %v2370_v32, 5  ;;  %v650_v26 = vperm.slane %v2370_v32, 7  ;;  %v649_v28 = vperm.slane %v2370_v32, 6 }
 0x206   : > { %v679_v36 = vsub.f32 %v2288_v43, %v647_v33  ;;  %v676_v37 = vsub.f32 %v2290_v20, %v644_v34  ;;  %v675_v38 = vsub.f32 %v2286_v42, %v643_v35  ;;  %v678_v55 = vsub.f32 %v2296_v46, %v646_v40 }
 0x207   : > { %v683_v43 = vsub.f32 %v2294_v45, %v651_v41  ;;  %v709_v20 = vmul.f32 1.442695, %v684_v54  ;;  %v655_v42 = vperm.slane %v2368_v31, 4  ;;  %v685_v46 = vsub.f32 %v2298_v48, %v653_v58 }
 0x208   : > { %v699_v47 = vmul.f32 1.442695, %v679_v36  ;;  %v693_v52 = vmul.f32 1.442695, %v676_v37  ;;  %v691_v53 = vmul.f32 1.442695, %v675_v38  ;;  %v677_v1 = vsub.f32 %v2292_v44, %v645_v63 }
 0x209   : > { %v697_v57 = vmul.f32 1.442695, %v678_v55  ;;  %v707_v62 = vmul.f32 1.442695, %v683_v43  ;;  %v687_v45 = vsub.f32 %v2304_v51, %v655_v42  ;;  %v711_v4 = vmul.f32 1.442695, %v685_v46 }
 0x20a   : > { %1742 = vpow2.f32 %v699_v47  ;;  %v695_v8 = vmul.f32 1.442695, %v677_v1  ;;  %v689_v44 = vsub.f32 %v2318_v59, %v657_v3  ;;  %v686_v48 = vsub.f32 %v2313_v56, %v654_v5 }
 0x20b   : > { %1744 = vpow2.f32 %v693_v52  ;;  %v715_v2 = vmul.f32 1.442695, %v687_v45  ;;  %v680_v14 = vsub.f32 %v2341_v10, %v648_v9  ;;  %v690_v56 = vsub.f32 %v2343_v12, %v658_v16 }
 0x20c   : > { %1746 = vpow2.f32 %v691_v53  ;;  %v719_v15 = vmul.f32 1.442695, %v689_v44  ;;  %v713_v18 = vmul.f32 1.442695, %v686_v48  ;;  %v688_v10 = vsub.f32 %v2320_v60, %v656_v19 }
 0x20d   : > { %1748 = vpow2.f32 %v709_v20  ;;  %v701_v22 = vmul.f32 1.442695, %v680_v14  ;;  %v721_v24 = vmul.f32 1.442695, %v690_v56  ;;  %v682_v60 = vsub.f32 %v2361_v25, %v650_v26 }
 0x20e   : > { %1750 = vpow2.f32 %v697_v57  ;;  %v717_v27 = vmul.f32 1.442695, %v688_v10  ;;  %v681_v12 = vsub.f32 %v2351_v17, %v649_v28 }
 0x20f   : > { %1752 = vpow2.f32 %v707_v62  ;;  %v705_v33 = vmul.f32 1.442695, %v682_v60 }
 0x210   : > { %v2386_v61 = vpop.eup %1742  ;;  %1754 = vpow2.f32 %v715_v2  ;;  %v703_v32 = vmul.f32 1.442695, %v681_v12 }
 0x211   : > { %v2389_v0 = vpop.eup %1744  ;;  %752 = vperm.xlu1 %1735, %v2386_v61   ;;  %1756 = vpow2.f32 %v711_v4 }
 0x212   : > { %v2392_v50 = vpop.eup %1746  ;;  %743 = vperm.xlu2 %1734, %v2389_v0   ;;  %1758 = vpow2.f32 %v695_v8 }
 0x213   : > { %740 = vperm.xlu0 %1733, %v2392_v50   ;;  %v2401_v6 = vpop.eup %1748  ;;  %1760 = vpow2.f32 %v719_v15 }
 0x214   : > { %v2404_v51 = vpop.eup %1750  ;;  %1762 = vpow2.f32 %v713_v18 }
 0x215   : > { %v2407_v13 = vpop.eup %1752  ;;  %1764 = vpow2.f32 %v701_v22 }
 0x216   : > { %v2416_v21 = vpop.eup %1754  ;;  %1766 = vpow2.f32 %v721_v24 }
 0x217   : > { %v2418_v23 = vpop.eup %1756  ;;  %1768 = vpow2.f32 %v717_v27 }
 0x218   : > { %v2421_v59 = vpop.eup %1758  ;;  %1770 = vpow2.f32 %v705_v33 }
 0x219   : > { %767 = vperm.xlu1 %1735, %v2401_v6   ;;  %v2429_v29 = vpop.eup %1760  ;;  %1772 = vpow2.f32 %v703_v32 }
 0x21a   : > { %749 = vperm.xlu2 %1734, %v2404_v51   ;;  %v2431_v30 = vpop.eup %1762 }
 0x21b   : > { %764 = vperm.xlu0 %1733, %v2407_v13   ;;  %v2434_v31 = vpop.eup %1764 }
 0x21c   : > { %v2440_v34 = vpop.eup %1766 }
 0x21d   : > { %v2442_v35 = vpop.eup %1768 }
 0x21e   : > { %v2446_v36 = vpop.eup %1770 }
 0x21f   : > { %v2448_v25 = vpop.eup %1772 }
 0x221   : > { %776 = vperm.xlu1 %1735, %v2416_v21  }
 0x222   : > { %770 = vperm.xlu2 %1734, %v2418_v23  }
 0x223   : > { %746 = vperm.xlu0 %1733, %v2421_v59  }
 0x229   : > { %782 = vperm.xlu1 %1735, %v2429_v29  }
 0x22a   : > { %773 = vperm.xlu2 %1734, %v2431_v30  }
 0x22b   : > { %755 = vperm.xlu0 %1733, %v2434_v31  }
 0x231   : > { %785 = vperm.xlu1 %1735, %v2440_v34  }
 0x232   : > { %779 = vperm.xlu2 %1734, %v2442_v35  }
 0x239   : > { %761 = vperm.xlu1 %1735, %v2446_v36  }
 0x23a   : > { %758 = vperm.xlu2 %1734, %v2448_v25  }
 0x26c   : > { %v744_v17 = vpop.permute.xlu2 %743 }
 0x26d   : > { %v788_v2 = vperm.slane %v744_v17, %v2300_v49 }
 0x274   : > { %v750_v37 = vpop.permute.xlu2 %749 }
 0x275   : > { %v790_v15 = vperm.slane %v750_v37, %v2300_v49 }
 0x27c   : > { %v771_v40 = vpop.permute.xlu2 %770 }
 0x27d   : > { %v797_v42 = vperm.slane %v771_v40, %v2300_v49 }
 0x283   : > { %v753_v38 = vpop.permute.xlu1 %752 }
 0x284   : > { %v774_v53 = vpop.permute.xlu2 %773  ;;  %v791_v24 = vperm.slane %v753_v38, %v2300_v49 }
 0x285   : > { %v741_v39 = vpop.permute.xlu0 %740  ;;  %v798_v63 = vperm.slane %v774_v53, %v2300_v49 }
 0x286   : > { %v787_v45 = vperm.slane %v741_v39, %v2300_v49 }
 0x288   : > { %v803_v8 = vsel %vm3019_vm3, %v788_v2, %v787_v45 }
 0x28b   : > { %v768_v41 = vpop.permute.xlu1 %767 }
 0x28c   : > { %v796_v54 = vperm.slane %v768_v41, %v2300_v49  ;;  %v780_v46 = vpop.permute.xlu2 %779 }
 0x28d   : > { %v765_v47 = vpop.permute.xlu0 %764  ;;  %v800_v9 = vperm.slane %v780_v46, %v2300_v49 }
 0x28e   : > { %v795_v55 = vperm.slane %v765_v47, %v2300_v49 }
 0x290   : > { %v810_v20 = vsel %vm3019_vm3, %v796_v54, %v795_v55 }
 0x291   : > { %v811_v58 = vsel %vm3018_vm4, %v797_v42, %v810_v20 }
 0x292   : > { %v812_v3 = vsel %vm3017_vm5, %v798_v63, %v811_v58 }
 0x293   : > { %v777_v52 = vpop.permute.xlu1 %776 }
 0x294   : > { %v799_v62 = vperm.slane %v777_v52, %v2300_v49  ;;  %v759_v27 = vpop.permute.xlu2 %758 }
 0x295   : > { %v747_v43 = vpop.permute.xlu0 %746  ;;  %v793_v12 = vperm.slane %v759_v27, %v2300_v49 }
 0x296   : > { %v789_v1 = vperm.slane %v747_v43, %v2300_v49  ;;  %v813_v4 = vsel %vm3016_vm6, %v799_v62, %v812_v3 }
 0x297   : > { %v814_v18 = vsel %vm3015_vm7, %v800_v9, %v813_v4 }
 0x298   : > { %v804_v44 = vsel %vm3018_vm4, %v789_v1, %v803_v8 }
 0x299   : > { %v805_v22 = vsel %vm3017_vm5, %v790_v15, %v804_v44 }
 0x29a   : > { %v806_v28 = vsel %vm3016_vm6, %v791_v24, %v805_v22 }
 0x29b   : > { %v783_v57 = vpop.permute.xlu1 %782 }
 0x29c   : > { %v801_v5 = vperm.slane %v783_v57, %v2300_v49 }
 0x29d   : > { %v756_v48 = vpop.permute.xlu0 %755 }
 0x29e   : > { %v815_v19 = vsel %vm3014_vm8, %v801_v5, %v814_v18  ;;  %v792_v56 = vperm.slane %v756_v48, %v2300_v49 }
 0x2a0   : > { %v807_v60 = vsel %vm3015_vm7, %v792_v56, %v806_v28 }
 0x2a1   : > { %v808_v17 = vsel %vm3014_vm8, %v793_v12, %v807_v60 }
 0x2a3   : > { %v786_v14 = vpop.permute.xlu1 %785 }
 0x2a4   : > { %v802_v16 = vperm.slane %v786_v14, %v2300_v49 }
 0x2a6   : > { %v816_v10 = vsel %vm3013_vm9, %v802_v16, %v815_v19 }
 0x2a7   : > { %v822_v26 = vsel %vm3012_vm10, %v816_v10, 0.0 }
 0x2a8   : > { %823 = vadd.xlane.f32.xlu0 %v822_v26 }
 0x2ab   : > { %v762_v33 = vpop.permute.xlu1 %761 }
 0x2ac   : > { %v794_v32 = vperm.slane %v762_v33, %v2300_v49 }
 0x2ae   : > { %v809_v37 = vsel %vm3013_vm9, %v794_v32, %v808_v17 }
 0x2af   : > { %v819_v39 = vsel %vm3012_vm10, %v809_v37, 0.0 }
 0x2b0   : > { %820 = vadd.xlane.f32.xlu2 %v819_v39 }
 0x31b   : > { %v2484_v38 = vpop.xlane.xlu0 %823 }
 0x31c   : > { %v2487_v40 = vperm.slane %v2484_v38, 0  ;;  %v2490_v41 = vperm.slane %v2484_v38, 1  ;;  %v2493_v47 = vperm.slane %v2484_v38, 6  ;;  %v2517_v42 = vperm.slane %v2484_v38, 2 }
 0x31d   : > { %v2522_v58 = vperm.slane %v2484_v38, 3 }
 0x31e   : > { %1774 = vrcp.f32 %v2487_v40  ;;  %v1080_v57 = vand.u32 2147483648, %v2493_v47  ;;  %vm1074_vm7 = vweird.f32 %v2493_v47 }
 0x31f   : > { %1776 = vrcp.f32 %v2490_v41 }
 0x320   : > { %1778 = vrcp.f32 %v2493_v47  ;;  %v2547_v48 = vor.u32 1.1754944e-38, %v1080_v57 }
 0x323   : > { %v2496_v52 = vpop.xlane.xlu2 %820 }
 0x324   : > { %v2500_v53 = vperm.slane %v2496_v52, 0  ;;  %v2503_v54 = vperm.slane %v2496_v52, 1  ;;  %v2506_v55 = vperm.slane %v2496_v52, 2  ;;  %v2510_v43 = vperm.slane %v2496_v52, 3  ;;  %v2528_v63 = vpop.eup %1774 }
 0x325   : > { %v2513_v20 = vperm.slane %v2496_v52, 4  ;;  %v2525_v62 = vperm.slane %v2496_v52, 5  ;;  %v2534_v2 = vpop.eup %1776  ;;  %v2544_v9 = vperm.slane %v2496_v52, 7 }
 0x326   : > { %1780 = vrcp.f32 %v2500_v53  ;;  %v885_v45 = vand.u32 2147483648, %v2503_v54  ;;  %v868_v46 = vand.u32 2147483647, %v2500_v53  ;;  %v883_v3 = vand.u32 2147483647, %v2503_v54  ;;  %v2540_v8 = vpop.eup %1778 }
 0x327   : > { %1782 = vrcp.f32 %v2503_v54  ;;  %v870_v4 = vand.u32 2147483648, %v2500_v53  ;;  %vm879_vm11 = vweird.f32 %v2503_v54  ;;  %vm864_vm12 = vweird.f32 %v2500_v53 }
 0x328   : > { %1784 = vrcp.f32 %v2506_v55  ;;  %v886_v19 = vor.u32 1.1754944e-38, %v885_v45  ;;  %vm2555_vm13 = vcmp.eq.f32.partialorder %v868_v46, 8.507059e+37  ;;  %vm2563_vm14 = vcmp.eq.f32.partialorder %v883_v3, 8.507059e+37 }
 0x329   : > { %1786 = vrcp.f32 %v2510_v43  ;;  %v871_v28 = vor.u32 1.1754944e-38, %v870_v4  ;;  %vm909_vm15 = vweird.f32 %v2510_v43  ;;  %v915_v60 = vand.u32 2147483648, %v2510_v43 }
 0x32a   : > { %1788 = vrcp.f32 %v2513_v20  ;;  %vm894_vm1 = vweird.f32 %v2506_v55  ;;  %vm924_vm2 = vweird.f32 %v2513_v20  ;;  %v900_v4 = vand.u32 2147483648, %v2506_v55 }
 0x32b   : > { %1790 = vrcp.f32 %v2517_v42  ;;  %v1070_v1 = vmul.f32 %v2540_v8, %v2493_v47  ;;  %vm1075_vm3 = vweird.f32 %v2540_v8  ;;  %v898_v56 = vand.u32 2147483647, %v2506_v55 }
 0x32c   : > { %v1781_v14 = vpop.eup %1780  ;;  %1792 = vrcp.f32 %v2525_v62 }
 0x32d   : > { %v1783_v18 = vpop.eup %1782  ;;  %v860_v22 = vmul.f32 %v1781_v14, %v2500_v53  ;;  %1794 = vrcp.f32 %v2544_v9  ;;  %vm865_vm10 = vweird.f32 %v1781_v14 }
 0x32e   : > { %v2560_v24 = vpop.eup %1784  ;;  %v875_v26 = vmul.f32 %v1783_v18, %v2503_v54  ;;  %vm880_vm9 = vweird.f32 %v1783_v18  ;;  %vm866_vm4 = vmor %vm864_vm12, %vm865_vm10  ;;  %1796 = vrcp.f32 %v2522_v58 }
 0x32f   : > { %v2570_v12 = vpop.eup %1786  ;;  %v861_v33 = vsub.f32 1.0, %v860_v22  ;;  %v890_v32 = vmul.f32 %v2560_v24, %v2506_v55  ;;  %vm895_vm8 = vweird.f32 %v2560_v24  ;;  %vm881_vm0 = vmor %vm879_vm11, %vm880_vm9  ;;  %vm899_vm9 = vcmp.eq.f32.partialorder %v898_v56, 8.507059e+37 }
 0x330   : > { %v1789_v17 = vpop.eup %1788  ;;  %v876_v37 = vsub.f32 1.0, %v875_v26  ;;  %v905_v39 = vmul.f32 %v2570_v12, %v2510_v43  ;;  %vm910_vm6 = vweird.f32 %v2570_v12  ;;  %vm2610_vm10 = vmor %vm894_vm1, %vm895_vm8  ;;  %vm939_vm11 = vweird.f32 %v2525_v62 }
 0x331   : > { %v2580_v57 = vpop.eup %1790  ;;  %v920_v45 = vmul.f32 %v1789_v17, %v2513_v20  ;;  %v862_v46 = vmul.f32 %v1781_v14, %v861_v33  ;;  %v891_v3 = vsub.f32 1.0, %v890_v32  ;;  %vm925_vm5 = vweird.f32 %v1789_v17 }
 0x332   : > { %v2584_v22 = vpop.eup %1792  ;;  %v877_v5 = vmul.f32 %v1783_v18, %v876_v37  ;;  %v906_v26 = vsub.f32 1.0, %v905_v39  ;;  %v1071_v32 = vsub.f32 1.0, %v1070_v1  ;;  %vm969_vm1 = vweird.f32 %v2544_v9 }
 0x333   : > { %v921_v44 = vsub.f32 1.0, %v920_v45  ;;  %v863_v10 = vadd.f32 %v1781_v14, %v862_v46  ;;  %v892_v16 = vmul.f32 %v2560_v24, %v891_v3  ;;  %v2595_v37 = vpop.eup %1794 }
 0x334   : > { %v878_v15 = vadd.f32 %v1783_v18, %v877_v5  ;;  %v907_v33 = vmul.f32 %v2570_v12, %v906_v26  ;;  %v935_v5 = vmul.f32 %v2584_v22, %v2525_v62  ;;  %v1072_v54 = vmul.f32 %v2540_v8, %v1071_v32 }
 0x335   : > { %v922_v39 = vmul.f32 %v1789_v17, %v921_v44  ;;  %v867_v45 = vsel %vm866_vm4, %v1781_v14, %v863_v10  ;;  %v893_v46 = vadd.f32 %v2560_v24, %v892_v16  ;;  %vm926_vm4 = vmor %vm924_vm2, %vm925_vm5  ;;  %v3044_v10 = vand.u32 2147483647, %v2513_v20 }
 0x336   : > { %v882_v53 = vsel %vm881_vm0, %v1783_v18, %v878_v15  ;;  %v872_v3 = vsel %vm2555_vm13, %v871_v28, %v867_v45  ;;  %v908_v1 = vadd.f32 %v2570_v12, %v907_v33  ;;  %vm2622_vm0 = vmor %vm909_vm15, %vm910_vm6  ;;  %v1073_v28 = vadd.f32 %v2540_v8, %v1072_v54 }
 0x337   : > { %v923_v14 = vadd.f32 %v1789_v17, %v922_v39  ;;  %v887_v16 = vsel %vm2563_vm14, %v886_v19, %v882_v53  ;;  %v873_v15 = vmul.f32 %v2392_v50, %v872_v3  ;;  %vm929_vm8 = vcmp.eq.f32.partialorder %v3044_v10, 8.507059e+37  ;;  %vm2646_vm5 = vmor %vm1074_vm7, %vm1075_vm3 }
 0x338   : > { %v3045_v19 = vand.u32 2147483648, %v2513_v20  ;;  %v888_v27 = vmul.f32 %v2389_v0, %v887_v16  ;;  %v912_v55 = vsel %vm2622_vm0, %v2570_v12, %v908_v1  ;;  %v897_v33 = vsel %vm2610_vm10, %v2560_v24, %v893_v46 }
 0x339   : > { %v927_v26 = vsel %vm926_vm4, %v1789_v17, %v923_v14  ;;  %1116 = vperm.xlu0 %1733, %v873_v15   ;;  %v936_v0 = vsub.f32 1.0, %v935_v5  ;;  %v916_v17 = vor.u32 1.1754944e-38, %v915_v60  ;;  %v901_v39 = vor.u32 1.1754944e-38, %v900_v4 }
 0x33a   : > { %v931_v50 = vor.u32 1.1754944e-38, %v3045_v19  ;;  %1119 = vperm.xlu1 %1735, %v888_v27   ;;  %v1077_v12 = vsel %vm2646_vm5, %v2540_v8, %v1073_v28  ;;  %v3048_v24 = vand.u32 2147483647, %v2510_v43  ;;  %v3049_v5 = vand.u32 2147483647, %v2493_v47  ;;  %v2693_v27 = vpop.eup %1796 }
 0x33b   : > { %v937_v46 = vmul.f32 %v2584_v22, %v936_v0  ;;  %v902_v3 = vsel %vm899_vm9, %v901_v39, %v897_v33  ;;  %v965_v60 = vmul.f32 %v2595_v37, %v2544_v9  ;;  %vm940_vm7 = vweird.f32 %v2584_v22 }
 0x33c   : > { %v932_v32 = vsel %vm929_vm8, %v931_v50, %v927_v26  ;;  %vm914_vm6 = vcmp.eq.f32.partialorder %v3048_v24, 8.507059e+37  ;;  %vm1079_vm3 = vcmp.eq.f32.partialorder %v3049_v5, 8.507059e+37  ;;  %v980_v47 = vmul.f32 %v2528_v63, %v2487_v40  ;;  %vm2675_vm12 = vmor %vm939_vm11, %vm940_vm7 }
 0x33d   : > { %v933_v45 = vmul.f32 %v2386_v61, %v932_v32  ;;  %v917_v53 = vsel %vm914_vm6, %v916_v17, %v912_v55  ;;  %v1082_v4 = vsel %vm1079_vm3, %v2547_v48, %v1077_v12  ;;  %v938_v8 = vadd.f32 %v2584_v22, %v937_v46 }
 0x33e   : > { %v945_v61 = vand.u32 2147483648, %v2525_v62  ;;  %v966_v43 = vsub.f32 1.0, %v965_v60  ;;  %v918_v1 = vmul.f32 %v2404_v51, %v917_v53  ;;  %v903_v44 = vmul.f32 %v2421_v59, %v902_v3 }
 0x33f   : > { %1128 = vperm.xlu2 %1734, %v933_v45   ;;  %v943_v48 = vand.u32 2147483647, %v2525_v62  ;;  %v995_v54 = vmul.f32 %v2534_v2, %v2490_v41  ;;  %v1083_v14 = vmul.f32 %v2429_v29, %v1082_v4  ;;  %vm970_vm13 = vweird.f32 %v2595_v37 }
 0x340   : > { %v967_v15 = vmul.f32 %v2595_v37, %v966_v43  ;;  %v981_v18 = vsub.f32 1.0, %v980_v47  ;;  %v942_v51 = vsel %vm2675_vm12, %v2584_v22, %v938_v8  ;;  %v946_v59 = vor.u32 1.1754944e-38, %v945_v61  ;;  %vm2700_vm2 = vmor %vm969_vm1, %vm970_vm13 }
 0x341   : > { %1122 = vperm.xlu0 %1733, %v903_v44   ;;  %v975_v62 = vand.u32 2147483648, %v2544_v9  ;;  %v996_v56 = vsub.f32 1.0, %v995_v54  ;;  %vm985_vm14 = vweird.f32 %v2528_v63  ;;  %v1010_v19 = vmul.f32 %v2580_v57, %v2517_v42 }
 0x342   : > { %1125 = vperm.xlu1 %1735, %v918_v1   ;;  %v968_v29 = vadd.f32 %v2595_v37, %v967_v15  ;;  %v982_v10 = vmul.f32 %v2528_v63, %v981_v18  ;;  %vm944_vm15 = vcmp.eq.f32.partialorder %v943_v48, 8.507059e+37  ;;  %v973_v50 = vand.u32 2147483647, %v2544_v9 }
 0x343   : > { %v997_v22 = vmul.f32 %v2534_v2, %v996_v56  ;;  %v2696_v28 = vperm.slane %v2484_v38, 4  ;;  %v947_v26 = vsel %vm944_vm15, %v946_v59, %v942_v51  ;;  %vm984_vm10 = vweird.f32 %v2487_v40 }
 0x344   : > { %v983_v33 = vadd.f32 %v2528_v63, %v982_v10  ;;  %v972_v9 = vsel %vm2700_vm2, %v2595_v37, %v968_v29  ;;  %v976_v20 = vor.u32 1.1754944e-38, %v975_v62  ;;  %vm986_vm0 = vmor %vm984_vm10, %vm985_vm14  ;;  %v3054_v0 = vand.u32 2147483647, %v2487_v40 }
 0x345   : > { %v3055_v32 = vand.u32 2147483648, %v2487_v40  ;;  %v998_v12 = vadd.f32 %v2534_v2, %v997_v22  ;;  %vm1000_vm8 = vweird.f32 %v2534_v2  ;;  %v1011_v45 = vsub.f32 1.0, %v1010_v19 }
 0x346   : > { %vm989_vm4 = vcmp.eq.f32.partialorder %v3054_v0, 8.507059e+37  ;;  %v987_v39 = vsel %vm986_vm0, %v2528_v63, %v983_v33  ;;  %v948_v24 = vmul.f32 %v2434_v31, %v947_v26  ;;  %vm974_vm5 = vcmp.eq.f32.partialorder %v973_v50, 8.507059e+37 }
 0x347   : > { %1158 = vperm.xlu2 %1734, %v1083_v14   ;;  %v991_v17 = vor.u32 1.1754944e-38, %v3055_v32  ;;  %v1005_v46 = vand.u32 2147483648, %v2490_v41  ;;  %v977_v53 = vsel %vm974_vm5, %v976_v20, %v972_v9  ;;  %vm999_vm6 = vweird.f32 %v2490_v41 }
 0x348   : > { %v1003_v40 = vand.u32 2147483647, %v2490_v41  ;;  %1798 = vrcp.f32 %v2696_v28  ;;  %vm1001_vm9 = vmor %vm999_vm6, %vm1000_vm8  ;;  %v1012_v31 = vmul.f32 %v2580_v57, %v1011_v45  ;;  %v1025_v5 = vmul.f32 %v2693_v27, %v2522_v58 }
 0x349   : > { %v992_v37 = vsel %vm989_vm4, %v991_v17, %v987_v39  ;;  %1131 = vperm.xlu0 %1733, %v948_v24   ;;  %v1002_v63 = vsel %vm1001_vm9, %v2534_v2, %v998_v12  ;;  %v978_v60 = vmul.f32 %v2446_v36, %v977_v53  ;;  %v1006_v4 = vor.u32 1.1754944e-38, %v1005_v46 }
 0x34a   : > { %v993_v3 = vmul.f32 %v2407_v13, %v992_v37  ;;  %vm1004_vm3 = vcmp.eq.f32.partialorder %v1003_v40, 8.507059e+37  ;;  %v2730_v13 = vperm.slane %v2484_v38, 5  ;;  %v1013_v8 = vadd.f32 %v2580_v57, %v1012_v31 }
 0x34b   : > { %v1007_v41 = vsel %vm1004_vm3, %v1006_v4, %v1002_v63  ;;  %vm1015_vm7 = vweird.f32 %v2580_v57  ;;  %v1026_v61 = vsub.f32 1.0, %v1025_v5  ;;  %v1020_v43 = vand.u32 2147483648, %v2517_v42 }
 0x34c   : > { %1140 = vperm.xlu1 %1735, %v993_v3   ;;  %v1008_v47 = vmul.f32 %v2401_v6, %v1007_v41  ;;  %vm1014_vm11 = vweird.f32 %v2517_v42  ;;  %v1018_v36 = vand.u32 2147483647, %v2517_v42  ;;  %1800 = vrcp.f32 %v2730_v13 }
 0x34d   : > { %vm1016_vm12 = vmor %vm1014_vm11, %vm1015_vm7  ;;  %v1027_v44 = vmul.f32 %v2693_v27, %v1026_v61  ;;  %v1021_v54 = vor.u32 1.1754944e-38, %v1020_v43  ;;  %v2743_v14 = vperm.slane %v2484_v38, 7  ;;  %vm1030_vm14 = vweird.f32 %v2693_v27 }
 0x34e   : > { %v1799_v2 = vpop.eup %1798  ;;  %v1017_v1 = vsel %vm1016_vm12, %v2580_v57, %v1013_v8  ;;  %vm1019_vm13 = vcmp.eq.f32.partialorder %v1018_v36, 8.507059e+37  ;;  %v1035_v18 = vand.u32 2147483648, %v2522_v58  ;;  %vm1029_vm15 = vweird.f32 %v2522_v58 }
 0x34f   : > { %1137 = vperm.xlu2 %1734, %v978_v60   ;;  %v1040_v48 = vmul.f32 %v1799_v2, %v2696_v28  ;;  %v1022_v6 = vsel %vm1019_vm13, %v1021_v54, %v1017_v1  ;;  %v1028_v16 = vadd.f32 %v2693_v27, %v1027_v44  ;;  %v1033_v51 = vand.u32 2147483647, %v2522_v58  ;;  %vm1031_vm1 = vmor %vm1029_vm15, %vm1030_vm14 }
 0x350   : > { %v1023_v57 = vmul.f32 %v2418_v23, %v1022_v6  ;;  %1802 = vrcp.f32 %v2743_v14  ;;  %v1036_v56 = vor.u32 1.1754944e-38, %v1035_v18  ;;  %v833_v29 = vperm.slane %v2496_v52, 6 }
 0x351   : > { %v1041_v42 = vsub.f32 1.0, %v1040_v48  ;;  %v1032_v38 = vsel %vm1031_vm1, %v2693_v27, %v1028_v16  ;;  %vm1034_vm2 = vcmp.eq.f32.partialorder %v1033_v51, 8.507059e+37  ;;  %vm1045_vm10 = vweird.f32 %v1799_v2  ;;  %v1810_v48 = vld [vmem:[%s2219_s20 + $0x20] sm:$0xff] }
 0x352   : > { %v1801_v15 = vpop.eup %1800  ;;  %v1037_v10 = vsel %vm1034_vm2, %v1036_v56, %v1032_v38  ;;  %v1050_v58 = vand.u32 2147483648, %v2696_v28  ;;  %vm1044_vm0 = vweird.f32 %v2696_v28  ;;  %v1048_v27 = vand.u32 2147483647, %v2696_v28  ;;  %v1813_v38 = vld [vmem:[%s2219_s20 + $0x70] sm:$0xff] }
 0x353   : > { %v1042_v59 = vmul.f32 %v1799_v2, %v1041_v42  ;;  %v1055_v62 = vmul.f32 %v1801_v15, %v2730_v13  ;;  %v1038_v22 = vmul.f32 %v2431_v30, %v1037_v10  ;;  %1804 = vrcp.f32 %v833_v29  ;;  %vm1046_vm4 = vmor %vm1044_vm0, %vm1045_vm10  ;;  %v1811_v42 = vld [vmem:[%s2219_s20] sm:$0xff] }
 0x354   : > { %1143 = vperm.xlu1 %1735, %v1008_v47   ;;  %v1051_v33 = vor.u32 1.1754944e-38, %v1050_v58  ;;  %vm1049_vm8 = vcmp.eq.f32.partialorder %v1048_v27, 8.507059e+37  ;;  %vm1060_vm5 = vweird.f32 %v1801_v15  ;;  %v1065_v30 = vand.u32 2147483648, %v2730_v13  ;;  %v1814_v27 = vld [vmem:[%s2219_s20 + $0x48] sm:$0xff] }
 0x355   : > { %v1043_v19 = vadd.f32 %v1799_v2, %v1042_v59  ;;  %v1056_v23 = vsub.f32 1.0, %v1055_v62  ;;  %vm1059_vm6 = vweird.f32 %v2730_v13  ;;  %v1063_v28 = vand.u32 2147483647, %v2730_v13 }
 0x356   : > { %v1803_v50 = vpop.eup %1802  ;;  %vm1061_vm9 = vmor %vm1059_vm6, %vm1060_vm5  ;;  %v1066_v24 = vor.u32 1.1754944e-38, %v1065_v30  ;;  %v1095_v3 = vand.u32 2147483648, %v2743_v14  ;;  %vm1089_vm11 = vweird.f32 %v2743_v14  ;;  %v960_v13 = vand.u32 2147483648, %v833_v29 }
 0x357   : > { %v1047_v26 = vsel %vm1046_vm4, %v1799_v2, %v1043_v19  ;;  %v1057_v55 = vmul.f32 %v1801_v15, %v1056_v23  ;;  %v1085_v52 = vmul.f32 %v1803_v50, %v2743_v14  ;;  %vm1064_vm3 = vcmp.eq.f32.partialorder %v1063_v28, 8.507059e+37 }
 0x358   : > { %v1052_v9 = vsel %vm1049_vm8, %v1051_v33, %v1047_v26  ;;  %vm1090_vm7 = vweird.f32 %v1803_v50  ;;  %v1096_v5 = vor.u32 1.1754944e-38, %v1095_v3  ;;  %vm954_vm15 = vweird.f32 %v833_v29  ;;  %v1815_v33 = vld [vmem:[%s2219_s20 + $0x50] sm:$0xff] }
 0x359   : > { %v1058_v20 = vadd.f32 %v1801_v15, %v1057_v55  ;;  %v1086_v0 = vsub.f32 1.0, %v1085_v52  ;;  %v1805_v32 = vpop.eup %1804  ;;  %v1053_v17 = vmul.f32 %v2416_v21, %v1052_v9  ;;  %v1093_v21 = vand.u32 2147483647, %v2743_v14  ;;  %vm1091_vm12 = vmor %vm1089_vm11, %vm1090_vm7 }
 0x35a   : > { %v950_v45 = vmul.f32 %v1805_v32, %v833_v29  ;;  %vm955_vm14 = vweird.f32 %v1805_v32  ;;  %v958_v8 = vand.u32 2147483647, %v833_v29  ;;  %v961_v61 = vor.u32 1.1754944e-38, %v960_v13 }
 0x35b   : > { %v1062_v39 = vsel %vm1061_vm9, %v1801_v15, %v1058_v20  ;;  %v1087_v12 = vmul.f32 %v1803_v50, %v1086_v0  ;;  %vm1094_vm13 = vcmp.eq.f32.partialorder %v1093_v21, 8.507059e+37  ;;  %vm956_vm1 = vmor %vm954_vm15, %vm955_vm14  ;;  %vm3056_vm10 = vcmask 261120   ;;  %v1816_v20 = vld [vmem:[%s2219_s20 + $0x40] sm:$0xff] }
 0x35c   : > { %1146 = vperm.xlu1 %1735, %v1023_v57   ;;  %v1067_v37 = vsel %vm1064_vm3, %v1066_v24, %v1062_v39  ;;  %v951_v53 = vsub.f32 1.0, %v950_v45  ;;  %vm959_vm2 = vcmp.eq.f32.partialorder %v958_v8, 8.507059e+37  ;;  %v1812_v57 = vld [vmem:[%s2219_s20 + $0x8] sm:$0xff]  ;;  %vm3057_vm0 = vmmov %vm3056_vm10  ;;  %vm3069_vm15 = vcmask 1042434  }
 0x35d   : > { %v1088_v46 = vadd.f32 %v1803_v50, %v1087_v12  ;;  %v1068_v40 = vmul.f32 %v2442_v35, %v1067_v37  ;;  %vm3058_vm4 = vmmov %vm3057_vm0  ;;  %v1819_v12 = vld [vmem:[%s2219_s20 + $0x10] sm:$0xff] }
 0x35e   : > { %v952_v31 = vmul.f32 %v1805_v32, %v951_v53  ;;  %vm3059_vm8 = vmmov %vm3057_vm0 }
 0x35f   : > { %v1092_v63 = vsel %vm1091_vm12, %v1803_v50, %v1088_v46  ;;  %v1820_v46 = vld [vmem:[%s2219_s20 + $0x18] sm:$0xff]  ;;  %vm3060_vm5 = vmmov %vm3057_vm0 }
 0x360   : > { %v1097_v60 = vsel %vm1094_vm13, %v1096_v5, %v1092_v63  ;;  %v953_v4 = vadd.f32 %v1805_v32, %v952_v31  ;;  %vm3061_vm6 = vmmov %vm3057_vm0  ;;  %vm3067_vm13 = vcmask 1041409  }
 0x361   : > { %v1098_v41 = vmul.f32 %v2440_v34, %v1097_v60  ;;  %vm3062_vm9 = vmmov %vm3057_vm0 }
 0x362   : > { %v957_v35 = vsel %vm956_vm1, %v1805_v32, %v953_v4  ;;  %v1817_v32 = vld [vmem:[%s2219_s20 + $0x58] sm:$0xff]  ;;  %vm3063_vm3 = vmmov %vm3057_vm0  ;;  %vm3070_vm1 = vcmask 1043459  }
 0x363   : > { %v962_v2 = vsel %vm959_vm2, %v961_v61, %v957_v35  ;;  %vm3064_vm7 = vmmov %vm3057_vm0 }
 0x364   : > { %1149 = vperm.xlu1 %1735, %v1038_v22   ;;  %v963_v43 = vmul.f32 %v2448_v25, %v962_v2  ;;  %vm3065_vm11 = vmmov %vm3057_vm0 }
 0x365   : > { %vm3066_vm12 = vmmov %vm3057_vm0 }
 0x366   : > { %vm3068_vm14 = vmmov %vm3057_vm0 }
 0x367   : > { %vm3071_vm2 = vmmov %vm3057_vm0 }
 0x36c   : > { %1152 = vperm.xlu1 %1735, %v1053_v17   ;;  %v1818_v17 = vld [vmem:[%s2219_s20 + $0x38] sm:$0xff] }
 0x374   : > { %1155 = vperm.xlu1 %1735, %v1068_v40  }
 0x37c   : > { %1161 = vperm.xlu1 %1735, %v1098_v41  }
 0x384   : > { %1134 = vperm.xlu1 %1735, %v963_v43  }
 0x399   : > { %v2776_v1 = vpop.permute.xlu2 %1128 }
 0x39a   : > { %v1217_v54 = vmul.f32 %v1810_v48, %v2776_v1  ;;  %v1167_v24 = vperm.slane %v2776_v1, %v2300_v49 }
 0x39c   : > { %v1257_v25 = vsel %vm3056_vm10, %v1217_v54, 0.0  ;;  %vm3072_vm10 = vmmov %vm3057_vm0 }
 0x39d   : > { %v1258_v18 = vrot.slane %v1257_v25, 4 }
 0x39f   : > { %v1259_v56 = vadd.f32 %v1258_v18, %v1257_v25 }
 0x3a1   : > { %v2785_v6 = vpop.permute.xlu2 %1158  ;;  %v1260_v55 = vrot.slane %v1259_v56, 2 }
 0x3a2   : > { %v1227_v59 = vmul.f32 %v1813_v38, %v2785_v6  ;;  %v1177_v21 = vperm.slane %v2785_v6, %v2300_v49 }
 0x3a3   : > { %v2818_v40 = vadd.f32 %v1260_v55, %v1259_v56 }
 0x3a4   : > { %v1327_v10 = vsel %vm3059_vm8, %v1227_v59, 0.0  ;;  %vm3076_vm8 = vmmov %vm3071_vm2 }
 0x3a5   : > { %v1328_v52 = vrot.slane %v1327_v10, 4 }
 0x3a7   : > { %v1329_v63 = vadd.f32 %v1328_v52, %v1327_v10 }
 0x3a9   : > { %v2800_v50 = vpop.permute.xlu2 %1137 }
 0x3aa   : > { %v1220_v28 = vmul.f32 %v1818_v17, %v2800_v50 }
 0x3ab   : > { %v2782_v14 = vpop.permute.xlu0 %1116 }
 0x3ac   : > { %v2770_v47 = vpop.permute.xlu1 %1119  ;;  %v1213_v15 = vmul.f32 %v1811_v42, %v2782_v14  ;;  %v1163_v60 = vperm.slane %v2782_v14, %v2300_v49  ;;  %v1278_v41 = vsel %vm3064_vm7, %v1220_v28, 0.0  ;;  %v1330_v14 = vrot.slane %v1329_v63, 2 }
 0x3ad   : > { %v1214_v51 = vmul.f32 %v1812_v57, %v2770_v47  ;;  %v1164_v5 = vperm.slane %v2770_v47, %v2300_v49  ;;  %v1821_v47 = vld [vmem:[%s2219_s20 + $0x60] sm:$0xff]  ;;  %v1279_v57 = vrot.slane %v1278_v41, 4 }
 0x3ae   : > { %v1229_v62 = vsel %vm3057_vm0, %v1213_v15, 0.0  ;;  %vm3073_vm0 = vcmask 1044484  }
 0x3af   : > { %v1236_v29 = vsel %vm3058_vm4, %v1214_v51, 0.0  ;;  %v1230_v19 = vrot.slane %v1229_v62, 4  ;;  %v1179_v51 = vsel %vm3067_vm13, %v1164_v5, %v1163_v60  ;;  %vm3075_vm4 = vmmov %vm3067_vm13 }
 0x3b0   : > { %v1237_v58 = vrot.slane %v1236_v29, 4  ;;  %vm3081_vm7 = vmmov %vm3075_vm4 }
 0x3b1   : > { %v1231_v39 = vadd.f32 %v1230_v19, %v1229_v62  ;;  %vm3084_vm13 = vmmov %vm3070_vm1 }
 0x3b2   : > { %v1238_v37 = vadd.f32 %v1237_v58, %v1236_v29  ;;  %v1344_v58 = vld [vmem:[#allocation8 + $0x18] sm:$0xff] }
 0x3b3   : > { %v1123_v22 = vpop.permute.xlu0 %1122  ;;  %v1232_v8 = vrot.slane %v1231_v39, 2  ;;  %1650 = vmatpush.msra.mxu3 %v1344_v58  ;;  %1391 = vmatpush.msra.mxu1 %v1344_v58 }
 0x3b4   : > { %v2772_v36 = vpop.permute.xlu1 %1125  ;;  %v1215_v45 = vmul.f32 %v1819_v12, %v1123_v22  ;;  %v1239_v43 = vrot.slane %v1238_v37, 2  ;;  %v1165_v42 = vperm.slane %v1123_v22, %v2300_v49 }
 0x3b5   : > { %v1216_v53 = vmul.f32 %v1820_v46, %v2772_v36  ;;  %v1233_v56 = vadd.f32 %v1232_v8, %v1231_v39  ;;  %v1166_v22 = vperm.slane %v2772_v36, %v2300_v49  ;;  %v1170_v36 = vperm.slane %v2800_v50, %v2300_v49  ;;  %v1341_v46 = vld [vmem:[#allocation8] sm:$0xff] }
 0x3b6   : > { %v1243_v35 = vsel %vm3065_vm11, %v1215_v45, 0.0  ;;  %v1180_v52 = vsel %vm3069_vm15, %v1165_v42, %v1179_v51  ;;  %v2850_v39 = vadd.f32 %v1279_v57, %v1278_v41 }
 0x3b7   : > { %v1250_v48 = vsel %vm3066_vm12, %v1216_v53, 0.0  ;;  %v1244_v38 = vrot.slane %v1243_v35, 4  ;;  %v1234_v53 = vrot.slane %v1233_v56, 1 }
 0x3b8   : > { %v1251_v29 = vrot.slane %v1250_v48, 4 }
 0x3b9   : > { %v1245_v17 = vadd.f32 %v1244_v38, %v1243_v35 }
 0x3ba   : > { %v1252_v12 = vadd.f32 %v1251_v29, %v1250_v48  ;;  %v1281_v48 = vrot.slane %v2850_v39, 2 }
 0x3bb   : > { %v2838_v59 = vpop.permute.xlu0 %1131  ;;  %v1246_v35 = vrot.slane %v1245_v17, 2 }
 0x3bd   : > { %v1247_v29 = vadd.f32 %v1246_v35, %v1245_v17 }
 0x3be   : > { %v2774_v34 = vpop.permute.xlu1 %1140 }
 0x3bf   : > { %v1221_v0 = vmul.f32 %v1816_v20, %v2774_v34 }
 0x3c1   : > { %v1285_v4 = vsel %vm3062_vm9, %v1221_v0, 0.0  ;;  %vm3079_vm9 = vcmask 1045509  }
 0x3c2   : > { %v1286_v15 = vrot.slane %v1285_v4, 4  ;;  %vm3082_vm11 = vmmov %vm3079_vm9 }
 0x3c6   : > { %v2778_v44 = vpop.permute.xlu1 %1143 }
 0x3c7   : > { %v1222_v26 = vmul.f32 %v1814_v27, %v2778_v44  ;;  %v1343_v27 = vld [vmem:[#allocation8 + $0x10] sm:$0xff] }
 0x3c8   : > { %1651 = vmatpush.msra.mxu3 %v1343_v27  ;;  %1392 = vmatpush.msra.mxu1 %v1343_v27 }
 0x3c9   : > { %v1292_v3 = vsel %vm3060_vm5, %v1222_v26, 0.0  ;;  %v1240_v26 = vadd.f32 %v1239_v43, %v1238_v37  ;;  %vm3077_vm5 = vmmov %vm3069_vm15 }
 0x3ca   : > { %v1293_v61 = vrot.slane %v1292_v3, 4  ;;  %vm3083_vm12 = vmmov %vm3077_vm5 }
 0x3cb   : > { %v1241_v60 = vrot.slane %v1240_v26, 1 }
 0x3cc   : > { %v1294_v10 = vadd.f32 %v1293_v61, %v1292_v3  ;;  %v1181_v3 = vsel %vm3070_vm1, %v1166_v22, %v1180_v52 }
 0x3cd   : > { %v1182_v42 = vsel %vm3073_vm0, %v1167_v24, %v1181_v3  ;;  %v2868_v57 = vadd.f32 %v1241_v60, %v1240_v26  ;;  %v1171_v24 = vperm.slane %v2774_v34, %v2300_v49 }
 0x3ce   : > { %v2787_v16 = vpop.permute.xlu1 %1146  ;;  %v1295_v45 = vrot.slane %v1294_v10, 2 }
 0x3cf   : > { %v1223_v9 = vmul.f32 %v1815_v33, %v2787_v16  ;;  %v1287_v33 = vadd.f32 %v1286_v15, %v1285_v4 }
 0x3d1   : > { %v1299_v31 = vsel %vm3061_vm6, %v1223_v9, 0.0  ;;  %v1822_v9 = vld [vmem:[%s2219_s20 + $0x28] sm:$0xff]  ;;  %v1288_v4 = vrot.slane %v1287_v33, 2  ;;  %vm3078_vm6 = vmmov %vm3070_vm1 }
 0x3d2   : > { %v1300_v54 = vrot.slane %v1299_v31, 4  ;;  %v1218_v20 = vmul.f32 %v1822_v9, %v2838_v59  ;;  %vm3087_vm1 = vmmov %vm3071_vm2 }
 0x3d3   : > { %v1289_v51 = vadd.f32 %v1288_v4, %v1287_v33 }
 0x3d4   : > { %v1301_v55 = vadd.f32 %v1300_v54, %v1299_v31  ;;  %v1253_v54 = vrot.slane %v1252_v12, 2 }
 0x3d5   : > { %v1290_v33 = vrot.slane %v1289_v51, 1 }
 0x3d6   : > { %v2798_v23 = vpop.permute.xlu1 %1149  ;;  %v1302_v31 = vrot.slane %v1301_v55, 2  ;;  %v2880_v1 = vadd.f32 %v1253_v54, %v1252_v12 }
 0x3d7   : > { %v1224_v30 = vmul.f32 %v1817_v32, %v2798_v23  ;;  %v1342_v32 = vld [vmem:[#allocation8 + $0x8] sm:$0xff]  ;;  %v1174_v9 = vperm.slane %v2798_v23, %v2300_v49 }
 0x3d8   : > { %1652 = vmatpush.msra.mxu3 %v1342_v32  ;;  %1393 = vmatpush.msra.mxu1 %v1342_v32  ;;  %v1255_v4 = vrot.slane %v2880_v1, 1 }
 0x3d9   : > { %v1306_v13 = vsel %vm3063_vm3, %v1224_v30, 0.0  ;;  %v2846_v30 = vadd.f32 %v1330_v14, %v1329_v63  ;;  %v1823_v63 = vld [vmem:[%s2219_s20 + $0x68] sm:$0xff]  ;;  %v2862_v14 = vadd.f32 %v1234_v53, %v1233_v56  ;;  %v1172_v56 = vperm.slane %v2778_v44, %v2300_v49  ;;  %vm3080_vm3 = vmmov %vm3073_vm0 }
 0x3da   : > { %v1307_v18 = vrot.slane %v1306_v13, 4  ;;  %1653 = vmatpush.msra.mxu3 %v1341_v46  ;;  %1394 = vmatpush.msra.mxu1 %v1341_v46  ;;  %v1173_v44 = vperm.slane %v2787_v16, %v2300_v49  ;;  %v1248_v46 = vrot.slane %v1247_v29, 1 }
 0x3db   : > { %v1332_v8 = vrot.slane %v2846_v30, 1  ;;  %v1186_v34 = vsel %vm3075_vm4, %v1172_v56, %v1171_v24 }
 0x3dc   : > { %v1308_v0 = vadd.f32 %v1307_v18, %v1306_v13  ;;  %v1264_v13 = vsel %vm3071_vm2, %v1218_v20, 0.0  ;;  %v1303_v18 = vadd.f32 %v1302_v31, %v1301_v55  ;;  %v1824_v55 = vld [vmem:[%s2219_s20 + $0x78] sm:$0xff]  ;;  %v1187_v3 = vsel %vm3077_vm5, %v1173_v44, %v1186_v34  ;;  %vm3088_vm2 = vmmov %vm3073_vm0 }
 0x3dd   : > { %v1265_v15 = vrot.slane %v1264_v13, 4  ;;  %vm3090_vm0 = vmmov %vm3079_vm9  ;;  %v1333_v6 = vadd.f32 %v1332_v8, %v2846_v30 }
 0x3de   : > { %v2831_v2 = vpop.permute.xlu1 %1152  ;;  %v1309_v41 = vrot.slane %v1308_v0, 2  ;;  %v1304_v22 = vrot.slane %v1303_v18, 1 }
 0x3df   : > { %v1225_v25 = vmul.f32 %v1821_v47, %v2831_v2  ;;  %v1296_v47 = vadd.f32 %v1295_v45, %v1294_v10  ;;  %v1168_v10 = vperm.slane %v2838_v59, %v2300_v49  ;;  %v1266_v59 = vadd.f32 %v1265_v15, %v1264_v13 }
 0x3e0   : > { %v1310_v38 = vadd.f32 %v1309_v41, %v1308_v0  ;;  %v1175_v32 = vperm.slane %v2831_v2, %v2300_v49  ;;  %v1305_v31 = vadd.f32 %v1304_v22, %v1303_v18  ;;  %v1291_v2 = vadd.f32 %v1290_v33, %v1289_v51  ;;  %v1825_v18 = vld [vmem:[%s2219_s20 + $0x30] sm:$0xff]  ;;  %s1464_s20 = sshll.u32 %s374_s11, 4  ;;  %s1465_s20 = int_to_ptr.vmem [resolvable:$true] %s1464_s20 }
 0x3e1   : > { %v1313_v62 = vsel %vm3068_vm14, %v1225_v25, 0.0  ;;  %v1297_v58 = vrot.slane %v1296_v47, 1  ;;  %v1267_v53 = vrot.slane %v1266_v59, 2  ;;  %v1183_v13 = vsel %vm3079_vm9, %v1168_v10, %v1182_v42 }
 0x3e2   : > { %v1314_v19 = vrot.slane %v1313_v62, 4  ;;  %v1311_v20 = vrot.slane %v1310_v38, 1  ;;  %v1249_v42 = vadd.f32 %v1248_v46, %v1247_v29  ;;  %vm3085_vm14 = vcmask 1046534  }
 0x3e3   : > { %v1298_v16 = vadd.f32 %v1297_v58, %v1296_v47  ;;  %vm3086_vm15 = vmmov %vm3085_vm14 }
 0x3e4   : > { %v1315_v28 = vadd.f32 %v1314_v19, %v1313_v62  ;;  %vm3095_vm9 = vmmov %vm3085_vm14 }
 0x3e5   : > { %v1368_v35 = vsel %vm3081_vm7, %v1298_v16, %v1291_v2 }
 0x3e6   : > { %v2852_v37 = vpop.permute.xlu1 %1155  ;;  %v1316_v61 = vrot.slane %v1315_v28, 2 }
 0x3e7   : > { %v1226_v5 = vmul.f32 %v1823_v63, %v2852_v37  ;;  %v1176_v12 = vperm.slane %v2852_v37, %v2300_v49  ;;  %v1188_v63 = vsel %vm3078_vm6, %v1174_v9, %v1187_v3  ;;  %vm3094_vm6 = vmmov %vm3081_vm7  ;;  %v1262_v9 = vrot.slane %v2818_v40, 1 }
 0x3e8   : > { %v1317_v19 = vadd.f32 %v1316_v61, %v1315_v28  ;;  %v1189_v41 = vsel %vm3080_vm3, %v1175_v32, %v1188_v63  ;;  %vm3097_vm7 = vmmov %vm3083_vm12 }
 0x3e9   : > { %v1320_v43 = vsel %vm3072_vm10, %v1226_v5, 0.0  ;;  %v1312_v5 = vadd.f32 %v1311_v20, %v1310_v38  ;;  %v1190_v61 = vsel %vm3082_vm11, %v1176_v12, %v1189_v41  ;;  %v1369_v38 = vsel %vm3083_vm12, %v1305_v31, %v1368_v35  ;;  %vm3098_vm11 = vmmov %vm3087_vm1 }
 0x3ea   : > { %v1321_v25 = vrot.slane %v1320_v43, 4  ;;  %v1318_v17 = vrot.slane %v1317_v19, 1  ;;  %vm3089_vm10 = vcmask 1047559   ;;  %vm3099_vm12 = vmmov %vm3084_vm13 }
 0x3eb   : > { %v1370_v56 = vsel %vm3084_vm13, %v1312_v5, %v1369_v38  ;;  %vm3091_vm4 = vmmov %vm3089_vm10 }
 0x3ec   : > { %v1322_v62 = vadd.f32 %v1321_v25, %v1320_v43  ;;  %v1319_v37 = vadd.f32 %v1318_v17, %v1317_v19  ;;  %v1191_v19 = vsel %vm3085_vm14, %v1177_v21, %v1190_v61  ;;  %v1282_v21 = vadd.f32 %v1281_v48, %v2850_v39  ;;  %vm3096_vm3 = vmmov %vm3091_vm4 }
 0x3ed   : > { %vm3100_vm13 = vmmov %vm3088_vm2 }
 0x3ee   : > { %v1323_v27 = vrot.slane %v1322_v62, 2  ;;  %v1162_v26 = vpop.permute.xlu1 %1161  ;;  %vm3101_vm14 = vmmov %vm3090_vm0 }
 0x3ef   : > { %v1228_v52 = vmul.f32 %v1824_v55, %v1162_v26  ;;  %v1178_v25 = vperm.slane %v1162_v26, %v2300_v49  ;;  %v1256_v55 = vadd.f32 %v1255_v4, %v2880_v1 }
 0x3f0   : > { %v1324_v0 = vadd.f32 %v1323_v27, %v1322_v62  ;;  %v1268_v62 = vadd.f32 %v1267_v53, %v1266_v59  ;;  %v1371_v27 = vsel %vm3088_vm2, %v1319_v37, %v1370_v56  ;;  %vm3104_vm2 = vmmov %vm3098_vm11 }
 0x3f1   : > { %v1334_v28 = vsel %vm3076_vm8, %v1228_v52, 0.0  ;;  %v1192_v22 = vsel %vm3091_vm4, %v1178_v25, %v1191_v19  ;;  %vm3092_vm8 = vcmask 64512   ;;  %vm3105_vm4 = vmmov %vm3104_vm2 }
 0x3f2   : > { %v1325_v23 = vrot.slane %v1324_v0, 1  ;;  %v1335_v45 = vrot.slane %v1334_v28, 4  ;;  %vm3093_vm5 = vmmov %vm3092_vm8  ;;  %v1269_v52 = vrot.slane %v1268_v62, 1 }
 0x3f3   : > { %1196 = vst.msk [vmem:[%s389_s2 + $0x8] sm:$0xff] %vm3093_vm5, %v1192_v22 }
 0x3f4   : > { %v1336_v60 = vadd.f32 %v1335_v45, %v1334_v28  ;;  %v1326_v43 = vadd.f32 %v1325_v23, %v1324_v0  ;;  %v1270_v20 = vadd.f32 %v1269_v52, %v1268_v62  ;;  %v1283_v0 = vrot.slane %v1282_v21, 1  ;;  %v1737_v23 = vld [vmem:[%s3001_s5] ss:$0 sm:$0xff] }
 0x3f5   : > { %1415 = vrot.lane.b32.xlu2 %v1737_v23, %s2031_s22 }
 0x3f6   : > { %v1337_v54 = vrot.slane %v1336_v60, 2  ;;  %v1135_v47 = vpop.permute.xlu1 %1134  ;;  %v1372_v44 = vsel %vm3090_vm0, %v1326_v43, %v1371_v27  ;;  %v1284_v17 = vadd.f32 %v1283_v0, %v1282_v21 }
 0x3f7   : > { %v1169_v15 = vperm.slane %v1135_v47, %v2300_v49  ;;  %v1219_v51 = vmul.f32 %v1825_v18, %v1135_v47  ;;  %v1373_v33 = vsel %vm3095_vm9, %v1333_v6, %v1372_v44 }
 0x3f8   : > { %v1338_v10 = vadd.f32 %v1337_v54, %v1336_v60 }
 0x3f9   : > { %v1184_v24 = vsel %vm3086_vm15, %v1169_v15, %v1183_v13  ;;  %v1271_v58 = vsel %vm3087_vm1, %v1219_v51, 0.0  ;;  %vm3102_vm15 = vmmov %vm3095_vm9 }
 0x3fa   : > { %v1185_v29 = vsel %vm3089_vm10, %v1170_v36, %v1184_v24  ;;  %v1272_v26 = vrot.slane %v1271_v58, 4  ;;  %v1339_v59 = vrot.slane %v1338_v10, 1  ;;  %v1361_v36 = vsel %vm3094_vm6, %v2868_v57, %v2862_v14  ;;  %vm3103_vm1 = vmmov %vm3096_vm3 }
 0x3fb   : > { %1195 = vst.msk [vmem:[%s389_s2] sm:$0xff] %vm3092_vm8, %v1185_v29  ;;  %v1362_v39 = vsel %vm3097_vm7, %v1249_v42, %v1361_v36  ;;  %v1263_v14 = vadd.f32 %v1262_v9, %v2818_v40  ;;  %vm3106_vm8 = vmmov %vm3104_vm2 }
 0x3fc   : > { %v1273_v49 = vadd.f32 %v1272_v26, %v1271_v58  ;;  %v1340_v50 = vadd.f32 %v1339_v59, %v1338_v10  ;;  %v1363_v34 = vsel %vm3099_vm12, %v1256_v55, %v1362_v39 }
 0x3fd   : > { %v1364_v32 = vsel %vm3100_vm13, %v1263_v14, %v1363_v34 }
 0x3fe   : > { %v1274_v30 = vrot.slane %v1273_v49, 2  ;;  %v1374_v8 = vsel %vm3096_vm3, %v1340_v50, %v1373_v33  ;;  %v1365_v28 = vsel %vm3101_vm14, %v1270_v20, %v1364_v32 }
 0x3ff   : > { %1635 = vmatmul.msk.f32.vlgmr.msra.gmra.mxu3 %vm3098_vm11, %v1374_v8 }
 0x400   : > { %v1275_v48 = vadd.f32 %v1274_v30, %v1273_v49 }
 0x402   : > { %v1276_v57 = vrot.slane %v1275_v48, 1 }
 0x404   : > { %v1277_v1 = vadd.f32 %v1276_v57, %v1275_v48 }
 0x406   : > { %v1366_v16 = vsel %vm3102_vm15, %v1277_v1, %v1365_v28 }
 0x407   : > { %v1367_v12 = vsel %vm3103_vm1, %v1284_v17, %v1366_v16 }
 0x408   : > { %1634 = vmatmul.msk.f32.vlgmr.msra.gmra.mxu1 %vm3104_vm2, %v1367_v12 }
 0x44f   : > { %v1416_v53 = vpop.permute.xlu2 %1415 }
 0x482   : > { %v1399_v40 = vpop.f32.mrf.mxu3 }
 0x483   : > { %1406 = vrot.lane.b32.xlu1 %v1399_v40, %s2031_s22 }
 0x485   : > { %v1396_v45 = vpop.f32.mrf.mxu1 }
 0x486   : > { %1404 = vrot.lane.b32.xlu0 %v1396_v45, %s2031_s22 }
 0x4f5   : > { %v1407_v46 = vpop.permute.xlu1 %1406 }
 0x4f6   : > { %v1411_v3 = vadd.f32 %v1407_v46, %v2241_v11 }
 0x4f8   : > { %v1419_v31 = vadd.f32 %v1416_v53, %v1411_v3  ;;  %v1405_v2 = vpop.permute.xlu0 %1404 }
 0x4f9   : > { %v1410_v63 = vadd.f32 %v1405_v2, %v2238_v7 }
 0x4fa   : > { %v1421_v5 = vmin.f32 %v1419_v31, 0.0  ;;  %vm1431_vm10 = vcmp.gt.f32.partialorder %v1419_v31, 0.0 }
 0x4fb   : > { %v1418_v60 = vadd.f32 %v1416_v53, %v1410_v63 }
 0x4fc   : > { %v1424_v4 = vmul.f32 1.442695, %v1421_v5 }
 0x4fd   : > { %v1420_v13 = vmin.f32 %v1418_v60, 0.0  ;;  %vm1430_vm0 = vcmp.gt.f32.partialorder %v1418_v60, 0.0 }
 0x4fe   : > { %1806 = vpow2.f32 %v1424_v4 }
 0x4ff   : > { %v1422_v41 = vmul.f32 1.442695, %v1420_v13 }
 0x501   : > { %1808 = vpow2.f32 %v1422_v41 }
 0x504   : > { %v1807_v37 = vpop.eup %1806 }
 0x505   : > { %v1637_v35 = vadd.f32 -1.0, %v1807_v37 }
 0x507   : > { %v1809_v61 = vpop.eup %1808  ;;  %v1429_v43 = vmul.f32 1.6732632, %v1637_v35 }
 0x508   : > { %v1636_v54 = vadd.f32 -1.0, %v1809_v61 }
 0x509   : > { %v1433_v11 = vsel %vm1431_vm10, %v1419_v31, %v1429_v43 }
 0x50a   : > { %v1435_v47 = vmul.f32 1.050701, %v1433_v11  ;;  %v1428_v25 = vmul.f32 1.6732632, %v1636_v54 }
 0x50c   : > { %1440 = vrot.lane.b32.xlu1 %v1435_v47, %s2032_s26  ;;  %v1432_v7 = vsel %vm1430_vm0, %v1418_v60, %v1428_v25 }
 0x50d   : > { %v1434_v15 = vmul.f32 1.050701, %v1432_v7 }
 0x50f   : > { %1438 = vrot.lane.b32.xlu0 %v1434_v15, %s2032_s26 }
 0x57e   : > { %v1441_v18 = vpop.permute.xlu1 %1440 }
 0x57f   : > { %1445 = vst.msk [vmem:[%s374_s11 + $0x8] sm:$0xff] %vm3105_vm4, %v1441_v18 }
 0x581   : > { %v1439_v51 = vpop.permute.xlu0 %1438 }
 0x582   : > { %1444 = vst.msk [vmem:[%s374_s11] sm:$0xff] %vm3106_vm8, %v1439_v51 }
 0x583   : > { %1973 = shalt.err (!%p1970_p12)
}
 0x584   : > { %s2033_s8 = smov 128   ;;  %s2034_s2 = smov 8  }
 0x585   : > { %1666 = dma.vmem_to_hbm [thread:$0]  (%p2147_p3), %s1465_s20, 256, %s1467_s30, %s1447_s14, %s2033_s8, %s2033_s8, %s2034_s2  }
 0x586 PF: > { %s1485_s29 = sand.u32 1, %s2012_s24   ;;  %p3108_p13 = scmp.ge.s32.totalorder %s2024_s27, 2 }
 0x587   : > { %s1486_s22 = scalar_lea.sflag [#allocation4], %s1485_s29 }
 0x588   : > { %p1683_p0 = pnand %p3108_p13, %p2110_p6 }
 0x58a   : > { %p1684_p5 = pneg %p1683_p0 }
 0x58c   : > { %2007 = dma.done.wait (%p1684_p5), %s1486_s22, 256  }
 0x58d   : > { %2009 = vsyncadd (%p1684_p5), %s1486_s22, 4294967040  ;;  %s3109_s27 = sld [smem:[#allocation18_spill]]  ;;  %s3112_s24 = smov %s2016_s25 }
 0x58e   : > { %s3110_s26 = sld [smem:[#allocation16_spill]] }
 0x58f   : > { %s3111_s19 = sld [smem:[#allocation19_spill]] }
 0x593   : > { %p25_p7 = scmp.ge.s32.totalorder %s3109_s27, 4  }
 0x594   : > { %s3113_s25 = smov %s3110_s26 }
 0x595   : > { %s3114_s26 = smov %s3111_s19  ;;  %27 = sbr.rel (!%p25_p7) target bundleno = 11 (0xb), region = 122 }
 0x59a   :  { %1500 = vsyncpa [#allocation3], 1 }
 0x59b   :  { %1502 = vsyncpa [#allocation3 + $0x1], 1 }
 0x59c   :  { %1503 = vsyncpa [#allocation6], 1 }
 0x59d   :  { %1505 = vsyncpa [#allocation6 + $0x1], 1 }
 0x59e   :  { %1506 = vsyncpa [#allocation9], 1 }
 0x59f   :  { %1507 = vsyncpa [#allocation4], 1 }
 0x5a0   :  { %1509 = vsyncpa [#allocation4 + $0x1], 1 }

</bundles_post_ra>
